<compile_context>
chip_gen: v6e
topology: v6e:2x2x1
jax: 0.10.0
libtpu: 0.0.40
codegen_flags: <defaults>
</compile_context>

<pallas_src>
import functools
import math

import jax
import jax.numpy as jnp
from jax import lax
from jax.experimental import pallas as pl
from jax.experimental.pallas import tpu as pltpu

CFG = dict(
    image_size=16,
    patch_size=8,
    num_channels=3,
    hidden_size=32,
    num_layers=2,
    num_heads=2,
    intermediate_size=64,
    layer_norm_eps=1e-12,  # HF ViT default
)


# ----------------------------------------------------------------------------
# Fused Pallas kernel: one program = full ViT forward for one image
# ----------------------------------------------------------------------------
def _vit_fused_kernel(
    # per-batch activations
    patches_ref,                # (seq, C*P*P); row 0 (CLS slot) is all zeros
    # fused constants / weights (shared across the batch grid)
    tokb_ref, pw_ref,
    ln1g_ref, ln1b_ref, wqkv_ref, bqkv_ref, wo_ref, bo_ref,
    ln2g_ref, ln2b_ref, w1_ref, b1_ref, w2_ref, b2_ref,
    lnfg_ref, lnfb_ref,
    rw1_ref, rb1_ref, rw2_ref, rb2_ref, rw3_ref, rb3_ref,
    # output
    out_ref,                    # (1, 1)
    # scratch
    ctx_ref,                    # (seq, H) VMEM: concatenated attention heads
    *, num_layers, num_heads, head_dim, hidden, eps, scale, inv_seq):
    f32 = jnp.float32

    def ln(x, g, b):
        mu = jnp.mean(x, axis=-1, keepdims=True)
        var = jnp.mean(jnp.square(x - mu), axis=-1, keepdims=True)
        return (x - mu) * lax.rsqrt(var + eps) * g + b

    def gelu(x):  # exact (erf) GELU, matching torch.nn.functional.gelu default
        return 0.5 * x * (1.0 + lax.erf(x * (1.0 / math.sqrt(2.0))))

    H = hidden
    hd = head_dim

    # ---- patch embedding + CLS + positional embedding -----------------------
    # patches row 0 is zero, so the CLS slot receives exactly cls + pos[0] from
    # the fused token bias; patch rows get conv-as-matmul + patch bias + pos.
    x = jnp.dot(patches_ref[...], pw_ref[...],
                preferred_element_type=f32) + tokb_ref[...]          # (seq, H)

    # ---- transformer encoder (pre-norm, HF ViTLayer) -------------------------
    for l in range(num_layers):                                       # L=2: unrolled
        h = ln(x, ln1g_ref[l], ln1b_ref[l])
        qkv = jnp.dot(h, wqkv_ref[l],
                      preferred_element_type=f32) + bqkv_ref[l]       # (seq, 3H)
        for hh in range(num_heads):
            q = qkv[:, hh * hd:(hh + 1) * hd]
            k = qkv[:, H + hh * hd:H + (hh + 1) * hd]
            v = qkv[:, 2 * H + hh * hd:2 * H + (hh + 1) * hd]
            s = lax.dot_general(q, k, (((1,), (1,)), ((), ())),
                                preferred_element_type=f32) * scale   # (seq, seq)
            m = jnp.max(s, axis=-1, keepdims=True)
            p = jnp.exp(s - m)
            p = p * pl.reciprocal(jnp.sum(p, axis=-1, keepdims=True), approx=True)
            ctx_ref[:, hh * hd:(hh + 1) * hd] = jnp.dot(
                p, v, preferred_element_type=f32)                     # (seq, hd)
        # single out-projection on the concatenated heads
        attn = jnp.dot(ctx_ref[...], wo_ref[l],
                       preferred_element_type=f32) + bo_ref[l]
        x = x + attn

        h2 = ln(x, ln2g_ref[l], ln2b_ref[l])
        m1 = gelu(jnp.dot(h2, w1_ref[l], preferred_element_type=f32) + b1_ref[l])
        x = x + jnp.dot(m1, w2_ref[l], preferred_element_type=f32) + b2_ref[l]

    # ---- final LayerNorm -> mean pool over sequence -> regression head -------
    lh = ln(x, lnfg_ref[...], lnfb_ref[...])
    pooled = jnp.sum(lh, axis=0, keepdims=True) * inv_seq             # (1, H)
    y = jnp.maximum(jnp.dot(pooled, rw1_ref[...],
                            preferred_element_type=f32) + rb1_ref[...], 0.0)
    y = jnp.maximum(jnp.dot(y, rw2_ref[...],
                            preferred_element_type=f32) + rb2_ref[...], 0.0)
    y = jnp.dot(y, rw3_ref[...], preferred_element_type=f32) + rb3_ref[...]
    out_ref[...] = y.astype(out_ref.dtype)


# ----------------------------------------------------------------------------
# Parameters (deterministic init; no checkpoint load)
# ----------------------------------------------------------------------------
def init_params(key):
    H = CFG["hidden_size"]
    P = CFG["patch_size"]
    C = CFG["num_channels"]
    I = CFG["intermediate_size"]
    n_patches = (CFG["image_size"] // P) ** 2
    seq = n_patches + 1

    keys = iter(jax.random.split(key, 128))

    def w(shape, scale=0.02):
        return (scale * jax.random.normal(next(keys), shape)).astype(jnp.float32)

    z = lambda *s: jnp.zeros(s, jnp.float32)
    o = lambda *s: jnp.ones(s, jnp.float32)

    params = {
        "patch_w": w((C * P * P, H)),   # Conv2d(C, H, P, stride=P) as a matmul
        "patch_b": z(H),
        "cls": w((1, 1, H)),
        "pos": w((1, seq, H)),
        "ln_f_g": o(H),
        "ln_f_b": z(H),
        "layers": [],
        "reg": {
            "w1": w((H, 128)), "b1": z(128),
            "w2": w((128, 64)), "b2": z(64),
            "w3": w((64, 1)), "b3": z(1),
        },
    }
    for _ in range(CFG["num_layers"]):
        params["layers"].append({
            "ln1_g": o(H), "ln1_b": z(H),
            "wq": w((H, H)), "bq": z(H),
            "wk": w((H, H)), "bk": z(H),
            "wv": w((H, H)), "bv": z(H),
            "wo": w((H, H)), "bo": z(H),
            "ln2_g": o(H), "ln2_b": z(H),
            "w1": w((H, I)), "b1": z(I),
            "w2": w((I, H)), "b2": z(H),
        })
    return params


# ----------------------------------------------------------------------------
# One-time weight packing (hoisted out of the jitted forward)
# ----------------------------------------------------------------------------
# Fixed argument order the kernel expects after the per-batch patches operand.
_WEIGHT_ORDER = (
    "tok_bias", "patch_w",
    "ln1_g", "ln1_b", "wqkv", "bqkv", "wo", "bo",
    "ln2_g", "ln2_b", "w1", "b1", "w2", "b2",
    "lnf_g", "lnf_b",
    "rw1", "rb1", "rw2", "rb2", "rw3", "rb3",
)


def prepare_params(params):
    H = CFG["hidden_size"]
    L = CFG["num_layers"]
    I = CFG["intermediate_size"]
    layers = params["layers"]
    stk = lambda n: jnp.stack([l[n] for l in layers])

    # fused token bias: pos (+ cls at row 0, + patch bias on patch rows 1..NP)
    tok = params["pos"][0]
    tok = tok.at[0].add(params["cls"][0, 0])
    tok = tok.at[1:].add(params["patch_b"])

    packed = {
        "tok_bias": tok,                                    # (seq, H)
        "patch_w": params["patch_w"],                       # (C*P*P, H)
        "ln1_g": stk("ln1_g").reshape(L, 1, H),
        "ln1_b": stk("ln1_b").reshape(L, 1, H),
        "wqkv": jnp.stack([jnp.concatenate([l["wq"], l["wk"], l["wv"]], axis=1)
                           for l in layers]),               # (L, H, 3H)
        "bqkv": jnp.stack([jnp.concatenate([l["bq"], l["bk"], l["bv"]], axis=0)
                           for l in layers]).reshape(L, 1, 3 * H),
        "wo": stk("wo"),                                    # (L, H, H) (unsplit)
        "bo": stk("bo").reshape(L, 1, H),
        "ln2_g": stk("ln2_g").reshape(L, 1, H),
        "ln2_b": stk("ln2_b").reshape(L, 1, H),
        "w1": stk("w1"),                                    # (L, H, I)
        "b1": stk("b1").reshape(L, 1, I),
        "w2": stk("w2"),                                    # (L, I, H)
        "b2": stk("b2").reshape(L, 1, H),
        "lnf_g": params["ln_f_g"].reshape(1, H),
        "lnf_b": params["ln_f_b"].reshape(1, H),
        "rw1": params["reg"]["w1"], "rb1": params["reg"]["b1"].reshape(1, 128),
        "rw2": params["reg"]["w2"], "rb2": params["reg"]["b2"].reshape(1, 64),
        "rw3": params["reg"]["w3"], "rb3": params["reg"]["b3"].reshape(1, 1),
    }
    return jax.tree_util.tree_map(jnp.asarray, packed)


# ----------------------------------------------------------------------------
# Forward pass (mirrors VisionTransformer.forward) — a single pallas_call
# ----------------------------------------------------------------------------
@jax.jit
def vit_forward(packed, pixel_values):
    B, C, Himg, Wimg = pixel_values.shape
    P = CFG["patch_size"]
    H = CFG["hidden_size"]
    nh = CFG["num_heads"]
    hd = H // nh
    L = CFG["num_layers"]
    eps = CFG["layer_norm_eps"]
    nph, npw = Himg // P, Wimg // P
    NP = nph * npw
    seq = NP + 1
    CPP = C * P * P

    # Conv2d(k=P, stride=P) patch embedding as a matmul: flatten (c, i, j).
    patches = pixel_values.reshape(B, C, nph, P, npw, P)
    patches = patches.transpose(0, 2, 4, 1, 3, 5).reshape(B, NP, CPP)
    # Prepend a zero row per batch -> the CLS token slot gets only cls + pos[0]
    # through the fused token bias (no extra scatter matmul in the kernel).
    patches = jnp.pad(patches, ((0, 0), (1, 0), (0, 0)))    # (B, seq, CPP)

    weights = [packed[k] for k in _WEIGHT_ORDER]

    kern = functools.partial(
        _vit_fused_kernel,
        num_layers=L, num_heads=nh, head_dim=hd, hidden=H,
        eps=eps, scale=1.0 / math.sqrt(hd), inv_seq=1.0 / seq)

    # Full-array VMEM-resident block for every shared weight (block index is
    # constant across the batch grid, so no re-fetch per step).
    def full_spec(a):
        return pl.BlockSpec(a.shape, lambda b, _n=a.ndim: (0,) * _n)

    out = pl.pallas_call(
        kern,
        grid=(B,),
        out_shape=jax.ShapeDtypeStruct((B, 1, 1), jnp.float32),
        in_specs=[pl.BlockSpec((None, seq, CPP), lambda b: (b, 0, 0))]
                 + [full_spec(a) for a in weights],
        out_specs=pl.BlockSpec((None, 1, 1), lambda b: (b, 0, 0)),
        scratch_shapes=[pltpu.VMEM((seq, H), jnp.float32)],   # concat'd heads
        compiler_params=pltpu.CompilerParams(
            dimension_semantics=("parallel",)),               # megacore on v7x
    )(patches, *weights)
    return out.reshape(B, 1)


if __name__ == "__main__":
    key = jax.random.PRNGKey(0)
    kp, kx = jax.random.split(key)
    params = init_params(kp)
    packed = prepare_params(params)          # one-time packing, outside the jit
    pixel_values = jax.random.normal(kx, (2, 3, 16, 16), dtype=jnp.float32)  # NCHW
    out = vit_forward(packed, pixel_values)
    out = jax.block_until_ready(out)
    assert out.shape == (2, 1) and out.dtype == jnp.float32
    assert bool(jnp.all(jnp.isfinite(out)))
    print("KERNEL_OK")
</pallas_src>

<mosaic_0001>
module attributes {stable_mosaic.version = 11 : i64} {
  func.func @_vit_fused_kernel(%arg0: i32, %arg1: memref<1x5x192xf32, #tpu.memory_space<vmem>>, %arg2: memref<5x32xf32, #tpu.memory_space<vmem>>, %arg3: memref<192x32xf32, #tpu.memory_space<vmem>>, %arg4: memref<2x1x32xf32, #tpu.memory_space<vmem>>, %arg5: memref<2x1x32xf32, #tpu.memory_space<vmem>>, %arg6: memref<2x32x96xf32, #tpu.memory_space<vmem>>, %arg7: memref<2x1x96xf32, #tpu.memory_space<vmem>>, %arg8: memref<2x32x32xf32, #tpu.memory_space<vmem>>, %arg9: memref<2x1x32xf32, #tpu.memory_space<vmem>>, %arg10: memref<2x1x32xf32, #tpu.memory_space<vmem>>, %arg11: memref<2x1x32xf32, #tpu.memory_space<vmem>>, %arg12: memref<2x32x64xf32, #tpu.memory_space<vmem>>, %arg13: memref<2x1x64xf32, #tpu.memory_space<vmem>>, %arg14: memref<2x64x32xf32, #tpu.memory_space<vmem>>, %arg15: memref<2x1x32xf32, #tpu.memory_space<vmem>>, %arg16: memref<1x32xf32, #tpu.memory_space<vmem>>, %arg17: memref<1x32xf32, #tpu.memory_space<vmem>>, %arg18: memref<32x128xf32, #tpu.memory_space<vmem>>, %arg19: memref<1x128xf32, #tpu.memory_space<vmem>>, %arg20: memref<128x64xf32, #tpu.memory_space<vmem>>, %arg21: memref<1x64xf32, #tpu.memory_space<vmem>>, %arg22: memref<64x1xf32, #tpu.memory_space<vmem>>, %arg23: memref<1x1xf32, #tpu.memory_space<vmem>>, %arg24: memref<1x1x1xf32, #tpu.memory_space<vmem>>, %arg25: memref<5x32xf32, #tpu.memory_space<vmem>>) attributes {dimension_semantics = [#tpu.dimension_semantics<parallel>], iteration_bounds = array<i64: 2>, scalar_prefetch = 0 : i64, scratch_operands = 1 : i64, tpu.core_type = #tpu.core_type<tc>, window_params = [{transform_indices = @transform_0, window_bounds = array<i64: 1, 5, 192>}, {pipeline_mode = #tpu.pipeline_mode<synchronous>, transform_indices = @transform_1, window_bounds = array<i64: 5, 32>}, {pipeline_mode = #tpu.pipeline_mode<synchronous>, transform_indices = @transform_2, window_bounds = array<i64: 192, 32>}, {pipeline_mode = #tpu.pipeline_mode<synchronous>, transform_indices = @transform_3, window_bounds = array<i64: 2, 1, 32>}, {pipeline_mode = #tpu.pipeline_mode<synchronous>, transform_indices = @transform_4, window_bounds = array<i64: 2, 1, 32>}, {pipeline_mode = #tpu.pipeline_mode<synchronous>, transform_indices = @transform_5, window_bounds = array<i64: 2, 32, 96>}, {pipeline_mode = #tpu.pipeline_mode<synchronous>, transform_indices = @transform_6, window_bounds = array<i64: 2, 1, 96>}, {pipeline_mode = #tpu.pipeline_mode<synchronous>, transform_indices = @transform_7, window_bounds = array<i64: 2, 32, 32>}, {pipeline_mode = #tpu.pipeline_mode<synchronous>, transform_indices = @transform_8, window_bounds = array<i64: 2, 1, 32>}, {pipeline_mode = #tpu.pipeline_mode<synchronous>, transform_indices = @transform_9, window_bounds = array<i64: 2, 1, 32>}, {pipeline_mode = #tpu.pipeline_mode<synchronous>, transform_indices = @transform_10, window_bounds = array<i64: 2, 1, 32>}, {pipeline_mode = #tpu.pipeline_mode<synchronous>, transform_indices = @transform_11, window_bounds = array<i64: 2, 32, 64>}, {pipeline_mode = #tpu.pipeline_mode<synchronous>, transform_indices = @transform_12, window_bounds = array<i64: 2, 1, 64>}, {pipeline_mode = #tpu.pipeline_mode<synchronous>, transform_indices = @transform_13, window_bounds = array<i64: 2, 64, 32>}, {pipeline_mode = #tpu.pipeline_mode<synchronous>, transform_indices = @transform_14, window_bounds = array<i64: 2, 1, 32>}, {pipeline_mode = #tpu.pipeline_mode<synchronous>, transform_indices = @transform_15, window_bounds = array<i64: 1, 32>}, {pipeline_mode = #tpu.pipeline_mode<synchronous>, transform_indices = @transform_16, window_bounds = array<i64: 1, 32>}, {pipeline_mode = #tpu.pipeline_mode<synchronous>, transform_indices = @transform_17, window_bounds = array<i64: 32, 128>}, {pipeline_mode = #tpu.pipeline_mode<synchronous>, transform_indices = @transform_18, window_bounds = array<i64: 1, 128>}, {pipeline_mode = #tpu.pipeline_mode<synchronous>, transform_indices = @transform_19, window_bounds = array<i64: 128, 64>}, {pipeline_mode = #tpu.pipeline_mode<synchronous>, transform_indices = @transform_20, window_bounds = array<i64: 1, 64>}, {pipeline_mode = #tpu.pipeline_mode<synchronous>, transform_indices = @transform_21, window_bounds = array<i64: 64, 1>}, {pipeline_mode = #tpu.pipeline_mode<synchronous>, transform_indices = @transform_22, window_bounds = array<i64: 1, 1>}, {transform_indices = @transform_23, window_bounds = array<i64: 1, 1, 1>}]} {
    %c0 = arith.constant 0 : index
    %c0_0 = arith.constant 0 : index
    %c0_1 = arith.constant 0 : index
    %0 = vector.load %arg1[%c0, %c0_0, %c0_1] : memref<1x5x192xf32, #tpu.memory_space<vmem>>, vector<1x5x192xf32>
    %1 = vector.shape_cast %0 : vector<1x5x192xf32> to vector<5x192xf32>
    %c0_2 = arith.constant 0 : index
    %c0_3 = arith.constant 0 : index
    %2 = vector.load %arg3[%c0_2, %c0_3] : memref<192x32xf32, #tpu.memory_space<vmem>>, vector<192x32xf32>
    %cst = arith.constant dense<0.000000e+00> : vector<5x32xf32>
    %3 = tpu.matmul %1, %2, %cst {dimension_numbers = #tpu.dot_dimension_numbers<[1], [0], [0], [1], [0, 0, 1, 1], [], []>} : vector<5x192xf32>, vector<192x32xf32>, vector<5x32xf32> -> vector<5x32xf32>
    %c0_4 = arith.constant 0 : index
    %c0_5 = arith.constant 0 : index
    %4 = vector.load %arg2[%c0_4, %c0_5] : memref<5x32xf32, #tpu.memory_space<vmem>>, vector<5x32xf32>
    %5 = arith.addf %3, %4 : vector<5x32xf32>
    %c0_6 = arith.constant 0 : index
    %c0_7 = arith.constant 0 : index
    %c0_8 = arith.constant 0 : index
    %6 = vector.load %arg4[%c0_6, %c0_7, %c0_8] : memref<2x1x32xf32, #tpu.memory_space<vmem>>, vector<1x1x32xf32>
    %7 = vector.shape_cast %6 : vector<1x1x32xf32> to vector<1x32xf32>
    %c0_9 = arith.constant 0 : index
    %c0_10 = arith.constant 0 : index
    %c0_11 = arith.constant 0 : index
    %8 = vector.load %arg5[%c0_9, %c0_10, %c0_11] : memref<2x1x32xf32, #tpu.memory_space<vmem>>, vector<1x1x32xf32>
    %9 = vector.shape_cast %8 : vector<1x1x32xf32> to vector<1x32xf32>
    %cst_12 = arith.constant dense<0.000000e+00> : vector<5xf32>
    %10 = vector.multi_reduction <add>, %5, %cst_12 [1] : vector<5x32xf32> to vector<5xf32>
    %11 = vector.shape_cast %10 : vector<5xf32> to vector<5x1xf32>
    %cst_13 = arith.constant 3.200000e+01 : f32
    %12 = vector.broadcast %cst_13 : f32 to vector<5x1xf32>
    %13 = arith.divf %11, %12 : vector<5x1xf32>
    %14 = vector.broadcast %13 : vector<5x1xf32> to vector<5x32xf32>
    %15 = arith.subf %5, %14 : vector<5x32xf32>
    %16 = arith.mulf %15, %15 : vector<5x32xf32>
    %cst_14 = arith.constant dense<0.000000e+00> : vector<5xf32>
    %17 = vector.multi_reduction <add>, %16, %cst_14 [1] : vector<5x32xf32> to vector<5xf32>
    %18 = vector.shape_cast %17 : vector<5xf32> to vector<5x1xf32>
    %cst_15 = arith.constant 3.200000e+01 : f32
    %19 = vector.broadcast %cst_15 : f32 to vector<5x1xf32>
    %20 = arith.divf %18, %19 : vector<5x1xf32>
    %21 = vector.broadcast %13 : vector<5x1xf32> to vector<5x32xf32>
    %22 = arith.subf %5, %21 : vector<5x32xf32>
    %cst_16 = arith.constant 9.99999996E-13 : f32
    %23 = vector.broadcast %cst_16 : f32 to vector<5x1xf32>
    %24 = arith.addf %20, %23 : vector<5x1xf32>
    %25 = math.rsqrt %24 : vector<5x1xf32>
    %26 = vector.broadcast %25 : vector<5x1xf32> to vector<5x32xf32>
    %27 = arith.mulf %22, %26 : vector<5x32xf32>
    %28 = vector.broadcast %7 : vector<1x32xf32> to vector<5x32xf32>
    %29 = arith.mulf %27, %28 : vector<5x32xf32>
    %30 = vector.broadcast %9 : vector<1x32xf32> to vector<5x32xf32>
    %31 = arith.addf %29, %30 : vector<5x32xf32>
    %c0_17 = arith.constant 0 : index
    %c0_18 = arith.constant 0 : index
    %c0_19 = arith.constant 0 : index
    %32 = vector.load %arg6[%c0_17, %c0_18, %c0_19] : memref<2x32x96xf32, #tpu.memory_space<vmem>>, vector<1x32x96xf32>
    %33 = vector.shape_cast %32 : vector<1x32x96xf32> to vector<32x96xf32>
    %cst_20 = arith.constant dense<0.000000e+00> : vector<5x96xf32>
    %34 = tpu.matmul %31, %33, %cst_20 {dimension_numbers = #tpu.dot_dimension_numbers<[1], [0], [0], [1], [0, 0, 1, 1], [], []>} : vector<5x32xf32>, vector<32x96xf32>, vector<5x96xf32> -> vector<5x96xf32>
    %c0_21 = arith.constant 0 : index
    %c0_22 = arith.constant 0 : index
    %c0_23 = arith.constant 0 : index
    %35 = vector.load %arg7[%c0_21, %c0_22, %c0_23] : memref<2x1x96xf32, #tpu.memory_space<vmem>>, vector<1x1x96xf32>
    %36 = vector.shape_cast %35 : vector<1x1x96xf32> to vector<1x96xf32>
    %37 = vector.broadcast %36 : vector<1x96xf32> to vector<5x96xf32>
    %38 = arith.addf %34, %37 : vector<5x96xf32>
    %39 = vector.extract_strided_slice %38 {offsets = [0, 0], sizes = [5, 16], strides = [1, 1]} : vector<5x96xf32> to vector<5x16xf32>
    %40 = vector.extract_strided_slice %38 {offsets = [0, 32], sizes = [5, 16], strides = [1, 1]} : vector<5x96xf32> to vector<5x16xf32>
    %41 = vector.extract_strided_slice %38 {offsets = [0, 64], sizes = [5, 16], strides = [1, 1]} : vector<5x96xf32> to vector<5x16xf32>
    %cst_24 = arith.constant dense<0.000000e+00> : vector<5x5xf32>
    %42 = tpu.matmul %39, %40, %cst_24 {dimension_numbers = #tpu.dot_dimension_numbers<[1], [1], [0], [0], [0, 0, 1, 0], [], []>} : vector<5x16xf32>, vector<5x16xf32>, vector<5x5xf32> -> vector<5x5xf32>
    %cst_25 = arith.constant 2.500000e-01 : f32
    %43 = vector.broadcast %cst_25 : f32 to vector<5x5xf32>
    %44 = arith.mulf %42, %43 : vector<5x5xf32>
    %cst_26 = arith.constant dense<0xFF800000> : vector<5xf32>
    %45 = vector.multi_reduction <maximumf>, %44, %cst_26 [1] : vector<5x5xf32> to vector<5xf32>
    %46 = vector.shape_cast %45 : vector<5xf32> to vector<5x1xf32>
    %47 = vector.broadcast %46 : vector<5x1xf32> to vector<5x5xf32>
    %48 = arith.subf %44, %47 : vector<5x5xf32>
    %49 = math.exp %48 : vector<5x5xf32>
    %cst_27 = arith.constant dense<0.000000e+00> : vector<5xf32>
    %50 = vector.multi_reduction <add>, %49, %cst_27 [1] : vector<5x5xf32> to vector<5xf32>
    %51 = vector.shape_cast %50 : vector<5xf32> to vector<5x1xf32>
    %52 = tpu.reciprocal %51 {approx = true} : vector<5x1xf32> -> vector<5x1xf32>
    %53 = vector.broadcast %52 : vector<5x1xf32> to vector<5x5xf32>
    %54 = arith.mulf %49, %53 : vector<5x5xf32>
    %cst_28 = arith.constant dense<0.000000e+00> : vector<5x16xf32>
    %55 = tpu.matmul %54, %41, %cst_28 {dimension_numbers = #tpu.dot_dimension_numbers<[1], [0], [0], [1], [0, 0, 1, 1], [], []>} : vector<5x5xf32>, vector<5x16xf32>, vector<5x16xf32> -> vector<5x16xf32>
    %c0_29 = arith.constant 0 : index
    %c0_30 = arith.constant 0 : index
    %56 = vector.load %arg25[%c0_29, %c0_30] : memref<5x32xf32, #tpu.memory_space<vmem>>, vector<5x16xf32>
    tpu.vector_store %arg25[%c0_29, %c0_30], %55 {strides = array<i32>} : memref<5x32xf32, #tpu.memory_space<vmem>>, vector<5x16xf32>,
    %57 = vector.extract_strided_slice %38 {offsets = [0, 16], sizes = [5, 16], strides = [1, 1]} : vector<5x96xf32> to vector<5x16xf32>
    %58 = vector.extract_strided_slice %38 {offsets = [0, 48], sizes = [5, 16], strides = [1, 1]} : vector<5x96xf32> to vector<5x16xf32>
    %59 = vector.extract_strided_slice %38 {offsets = [0, 80], sizes = [5, 16], strides = [1, 1]} : vector<5x96xf32> to vector<5x16xf32>
    %cst_31 = arith.constant dense<0.000000e+00> : vector<5x5xf32>
    %60 = tpu.matmul %57, %58, %cst_31 {dimension_numbers = #tpu.dot_dimension_numbers<[1], [1], [0], [0], [0, 0, 1, 0], [], []>} : vector<5x16xf32>, vector<5x16xf32>, vector<5x5xf32> -> vector<5x5xf32>
    %cst_32 = arith.constant 2.500000e-01 : f32
    %61 = vector.broadcast %cst_32 : f32 to vector<5x5xf32>
    %62 = arith.mulf %60, %61 : vector<5x5xf32>
    %cst_33 = arith.constant dense<0xFF800000> : vector<5xf32>
    %63 = vector.multi_reduction <maximumf>, %62, %cst_33 [1] : vector<5x5xf32> to vector<5xf32>
    %64 = vector.shape_cast %63 : vector<5xf32> to vector<5x1xf32>
    %65 = vector.broadcast %64 : vector<5x1xf32> to vector<5x5xf32>
    %66 = arith.subf %62, %65 : vector<5x5xf32>
    %67 = math.exp %66 : vector<5x5xf32>
    %cst_34 = arith.constant dense<0.000000e+00> : vector<5xf32>
    %68 = vector.multi_reduction <add>, %67, %cst_34 [1] : vector<5x5xf32> to vector<5xf32>
    %69 = vector.shape_cast %68 : vector<5xf32> to vector<5x1xf32>
    %70 = tpu.reciprocal %69 {approx = true} : vector<5x1xf32> -> vector<5x1xf32>
    %71 = vector.broadcast %70 : vector<5x1xf32> to vector<5x5xf32>
    %72 = arith.mulf %67, %71 : vector<5x5xf32>
    %cst_35 = arith.constant dense<0.000000e+00> : vector<5x16xf32>
    %73 = tpu.matmul %72, %59, %cst_35 {dimension_numbers = #tpu.dot_dimension_numbers<[1], [0], [0], [1], [0, 0, 1, 1], [], []>} : vector<5x5xf32>, vector<5x16xf32>, vector<5x16xf32> -> vector<5x16xf32>
    %c0_36 = arith.constant 0 : index
    %c16 = arith.constant 16 : index
    %74 = vector.load %arg25[%c0_36, %c16] : memref<5x32xf32, #tpu.memory_space<vmem>>, vector<5x16xf32>
    tpu.vector_store %arg25[%c0_36, %c16], %73 {strides = array<i32>} : memref<5x32xf32, #tpu.memory_space<vmem>>, vector<5x16xf32>,
    %c0_37 = arith.constant 0 : index
    %c0_38 = arith.constant 0 : index
    %75 = vector.load %arg25[%c0_37, %c0_38] : memref<5x32xf32, #tpu.memory_space<vmem>>, vector<5x32xf32>
    %c0_39 = arith.constant 0 : index
    %c0_40 = arith.constant 0 : index
    %c0_41 = arith.constant 0 : index
    %76 = vector.load %arg8[%c0_39, %c0_40, %c0_41] : memref<2x32x32xf32, #tpu.memory_space<vmem>>, vector<1x32x32xf32>
    %77 = vector.shape_cast %76 : vector<1x32x32xf32> to vector<32x32xf32>
    %cst_42 = arith.constant dense<0.000000e+00> : vector<5x32xf32>
    %78 = tpu.matmul %75, %77, %cst_42 {dimension_numbers = #tpu.dot_dimension_numbers<[1], [0], [0], [1], [0, 0, 1, 1], [], []>} : vector<5x32xf32>, vector<32x32xf32>, vector<5x32xf32> -> vector<5x32xf32>
    %c0_43 = arith.constant 0 : index
    %c0_44 = arith.constant 0 : index
    %c0_45 = arith.constant 0 : index
    %79 = vector.load %arg9[%c0_43, %c0_44, %c0_45] : memref<2x1x32xf32, #tpu.memory_space<vmem>>, vector<1x1x32xf32>
    %80 = vector.shape_cast %79 : vector<1x1x32xf32> to vector<1x32xf32>
    %81 = vector.broadcast %80 : vector<1x32xf32> to vector<5x32xf32>
    %82 = arith.addf %78, %81 : vector<5x32xf32>
    %83 = arith.addf %5, %82 : vector<5x32xf32>
    %c0_46 = arith.constant 0 : index
    %c0_47 = arith.constant 0 : index
    %c0_48 = arith.constant 0 : index
    %84 = vector.load %arg10[%c0_46, %c0_47, %c0_48] : memref<2x1x32xf32, #tpu.memory_space<vmem>>, vector<1x1x32xf32>
    %85 = vector.shape_cast %84 : vector<1x1x32xf32> to vector<1x32xf32>
    %c0_49 = arith.constant 0 : index
    %c0_50 = arith.constant 0 : index
    %c0_51 = arith.constant 0 : index
    %86 = vector.load %arg11[%c0_49, %c0_50, %c0_51] : memref<2x1x32xf32, #tpu.memory_space<vmem>>, vector<1x1x32xf32>
    %87 = vector.shape_cast %86 : vector<1x1x32xf32> to vector<1x32xf32>
    %cst_52 = arith.constant dense<0.000000e+00> : vector<5xf32>
    %88 = vector.multi_reduction <add>, %83, %cst_52 [1] : vector<5x32xf32> to vector<5xf32>
    %89 = vector.shape_cast %88 : vector<5xf32> to vector<5x1xf32>
    %cst_53 = arith.constant 3.200000e+01 : f32
    %90 = vector.broadcast %cst_53 : f32 to vector<5x1xf32>
    %91 = arith.divf %89, %90 : vector<5x1xf32>
    %92 = vector.broadcast %91 : vector<5x1xf32> to vector<5x32xf32>
    %93 = arith.subf %83, %92 : vector<5x32xf32>
    %94 = arith.mulf %93, %93 : vector<5x32xf32>
    %cst_54 = arith.constant dense<0.000000e+00> : vector<5xf32>
    %95 = vector.multi_reduction <add>, %94, %cst_54 [1] : vector<5x32xf32> to vector<5xf32>
    %96 = vector.shape_cast %95 : vector<5xf32> to vector<5x1xf32>
    %cst_55 = arith.constant 3.200000e+01 : f32
    %97 = vector.broadcast %cst_55 : f32 to vector<5x1xf32>
    %98 = arith.divf %96, %97 : vector<5x1xf32>
    %99 = vector.broadcast %91 : vector<5x1xf32> to vector<5x32xf32>
    %100 = arith.subf %83, %99 : vector<5x32xf32>
    %cst_56 = arith.constant 9.99999996E-13 : f32
    %101 = vector.broadcast %cst_56 : f32 to vector<5x1xf32>
    %102 = arith.addf %98, %101 : vector<5x1xf32>
    %103 = math.rsqrt %102 : vector<5x1xf32>
    %104 = vector.broadcast %103 : vector<5x1xf32> to vector<5x32xf32>
    %105 = arith.mulf %100, %104 : vector<5x32xf32>
    %106 = vector.broadcast %85 : vector<1x32xf32> to vector<5x32xf32>
    %107 = arith.mulf %105, %106 : vector<5x32xf32>
    %108 = vector.broadcast %87 : vector<1x32xf32> to vector<5x32xf32>
    %109 = arith.addf %107, %108 : vector<5x32xf32>
    %c0_57 = arith.constant 0 : index
    %c0_58 = arith.constant 0 : index
    %c0_59 = arith.constant 0 : index
    %110 = vector.load %arg12[%c0_57, %c0_58, %c0_59] : memref<2x32x64xf32, #tpu.memory_space<vmem>>, vector<1x32x64xf32>
    %111 = vector.shape_cast %110 : vector<1x32x64xf32> to vector<32x64xf32>
    %cst_60 = arith.constant dense<0.000000e+00> : vector<5x64xf32>
    %112 = tpu.matmul %109, %111, %cst_60 {dimension_numbers = #tpu.dot_dimension_numbers<[1], [0], [0], [1], [0, 0, 1, 1], [], []>} : vector<5x32xf32>, vector<32x64xf32>, vector<5x64xf32> -> vector<5x64xf32>
    %c0_61 = arith.constant 0 : index
    %c0_62 = arith.constant 0 : index
    %c0_63 = arith.constant 0 : index
    %113 = vector.load %arg13[%c0_61, %c0_62, %c0_63] : memref<2x1x64xf32, #tpu.memory_space<vmem>>, vector<1x1x64xf32>
    %114 = vector.shape_cast %113 : vector<1x1x64xf32> to vector<1x64xf32>
    %115 = vector.broadcast %114 : vector<1x64xf32> to vector<5x64xf32>
    %116 = arith.addf %112, %115 : vector<5x64xf32>
    %cst_64 = arith.constant 5.000000e-01 : f32
    %117 = vector.broadcast %cst_64 : f32 to vector<5x64xf32>
    %118 = arith.mulf %117, %116 : vector<5x64xf32>
    %cst_65 = arith.constant 0.707106769 : f32
    %119 = vector.broadcast %cst_65 : f32 to vector<5x64xf32>
    %120 = arith.mulf %116, %119 : vector<5x64xf32>
    %121 = math.erf %120 : vector<5x64xf32>
    %cst_66 = arith.constant 1.000000e+00 : f32
    %122 = vector.broadcast %cst_66 : f32 to vector<5x64xf32>
    %123 = arith.addf %122, %121 : vector<5x64xf32>
    %124 = arith.mulf %118, %123 : vector<5x64xf32>
    %c0_67 = arith.constant 0 : index
    %c0_68 = arith.constant 0 : index
    %c0_69 = arith.constant 0 : index
    %125 = vector.load %arg14[%c0_67, %c0_68, %c0_69] : memref<2x64x32xf32, #tpu.memory_space<vmem>>, vector<1x64x32xf32>
    %126 = vector.shape_cast %125 : vector<1x64x32xf32> to vector<64x32xf32>
    %cst_70 = arith.constant dense<0.000000e+00> : vector<5x32xf32>
    %127 = tpu.matmul %124, %126, %cst_70 {dimension_numbers = #tpu.dot_dimension_numbers<[1], [0], [0], [1], [0, 0, 1, 1], [], []>} : vector<5x64xf32>, vector<64x32xf32>, vector<5x32xf32> -> vector<5x32xf32>
    %128 = arith.addf %83, %127 : vector<5x32xf32>
    %c0_71 = arith.constant 0 : index
    %c0_72 = arith.constant 0 : index
    %c0_73 = arith.constant 0 : index
    %129 = vector.load %arg15[%c0_71, %c0_72, %c0_73] : memref<2x1x32xf32, #tpu.memory_space<vmem>>, vector<1x1x32xf32>
    %130 = vector.shape_cast %129 : vector<1x1x32xf32> to vector<1x32xf32>
    %131 = vector.broadcast %130 : vector<1x32xf32> to vector<5x32xf32>
    %132 = arith.addf %128, %131 : vector<5x32xf32>
    %c1 = arith.constant 1 : index
    %c0_74 = arith.constant 0 : index
    %c0_75 = arith.constant 0 : index
    %133 = vector.load %arg4[%c1, %c0_74, %c0_75] : memref<2x1x32xf32, #tpu.memory_space<vmem>>, vector<1x1x32xf32>
    %134 = vector.shape_cast %133 : vector<1x1x32xf32> to vector<1x32xf32>
    %c1_76 = arith.constant 1 : index
    %c0_77 = arith.constant 0 : index
    %c0_78 = arith.constant 0 : index
    %135 = vector.load %arg5[%c1_76, %c0_77, %c0_78] : memref<2x1x32xf32, #tpu.memory_space<vmem>>, vector<1x1x32xf32>
    %136 = vector.shape_cast %135 : vector<1x1x32xf32> to vector<1x32xf32>
    %cst_79 = arith.constant dense<0.000000e+00> : vector<5xf32>
    %137 = vector.multi_reduction <add>, %132, %cst_79 [1] : vector<5x32xf32> to vector<5xf32>
    %138 = vector.shape_cast %137 : vector<5xf32> to vector<5x1xf32>
    %cst_80 = arith.constant 3.200000e+01 : f32
    %139 = vector.broadcast %cst_80 : f32 to vector<5x1xf32>
    %140 = arith.divf %138, %139 : vector<5x1xf32>
    %141 = vector.broadcast %140 : vector<5x1xf32> to vector<5x32xf32>
    %142 = arith.subf %132, %141 : vector<5x32xf32>
    %143 = arith.mulf %142, %142 : vector<5x32xf32>
    %cst_81 = arith.constant dense<0.000000e+00> : vector<5xf32>
    %144 = vector.multi_reduction <add>, %143, %cst_81 [1] : vector<5x32xf32> to vector<5xf32>
    %145 = vector.shape_cast %144 : vector<5xf32> to vector<5x1xf32>
    %cst_82 = arith.constant 3.200000e+01 : f32
    %146 = vector.broadcast %cst_82 : f32 to vector<5x1xf32>
    %147 = arith.divf %145, %146 : vector<5x1xf32>
    %148 = vector.broadcast %140 : vector<5x1xf32> to vector<5x32xf32>
    %149 = arith.subf %132, %148 : vector<5x32xf32>
    %cst_83 = arith.constant 9.99999996E-13 : f32
    %150 = vector.broadcast %cst_83 : f32 to vector<5x1xf32>
    %151 = arith.addf %147, %150 : vector<5x1xf32>
    %152 = math.rsqrt %151 : vector<5x1xf32>
    %153 = vector.broadcast %152 : vector<5x1xf32> to vector<5x32xf32>
    %154 = arith.mulf %149, %153 : vector<5x32xf32>
    %155 = vector.broadcast %134 : vector<1x32xf32> to vector<5x32xf32>
    %156 = arith.mulf %154, %155 : vector<5x32xf32>
    %157 = vector.broadcast %136 : vector<1x32xf32> to vector<5x32xf32>
    %158 = arith.addf %156, %157 : vector<5x32xf32>
    %c1_84 = arith.constant 1 : index
    %c0_85 = arith.constant 0 : index
    %c0_86 = arith.constant 0 : index
    %159 = vector.load %arg6[%c1_84, %c0_85, %c0_86] : memref<2x32x96xf32, #tpu.memory_space<vmem>>, vector<1x32x96xf32>
    %160 = vector.shape_cast %159 : vector<1x32x96xf32> to vector<32x96xf32>
    %cst_87 = arith.constant dense<0.000000e+00> : vector<5x96xf32>
    %161 = tpu.matmul %158, %160, %cst_87 {dimension_numbers = #tpu.dot_dimension_numbers<[1], [0], [0], [1], [0, 0, 1, 1], [], []>} : vector<5x32xf32>, vector<32x96xf32>, vector<5x96xf32> -> vector<5x96xf32>
    %c1_88 = arith.constant 1 : index
    %c0_89 = arith.constant 0 : index
    %c0_90 = arith.constant 0 : index
    %162 = vector.load %arg7[%c1_88, %c0_89, %c0_90] : memref<2x1x96xf32, #tpu.memory_space<vmem>>, vector<1x1x96xf32>
    %163 = vector.shape_cast %162 : vector<1x1x96xf32> to vector<1x96xf32>
    %164 = vector.broadcast %163 : vector<1x96xf32> to vector<5x96xf32>
    %165 = arith.addf %161, %164 : vector<5x96xf32>
    %166 = vector.extract_strided_slice %165 {offsets = [0, 0], sizes = [5, 16], strides = [1, 1]} : vector<5x96xf32> to vector<5x16xf32>
    %167 = vector.extract_strided_slice %165 {offsets = [0, 32], sizes = [5, 16], strides = [1, 1]} : vector<5x96xf32> to vector<5x16xf32>
    %168 = vector.extract_strided_slice %165 {offsets = [0, 64], sizes = [5, 16], strides = [1, 1]} : vector<5x96xf32> to vector<5x16xf32>
    %cst_91 = arith.constant dense<0.000000e+00> : vector<5x5xf32>
    %169 = tpu.matmul %166, %167, %cst_91 {dimension_numbers = #tpu.dot_dimension_numbers<[1], [1], [0], [0], [0, 0, 1, 0], [], []>} : vector<5x16xf32>, vector<5x16xf32>, vector<5x5xf32> -> vector<5x5xf32>
    %cst_92 = arith.constant 2.500000e-01 : f32
    %170 = vector.broadcast %cst_92 : f32 to vector<5x5xf32>
    %171 = arith.mulf %169, %170 : vector<5x5xf32>
    %cst_93 = arith.constant dense<0xFF800000> : vector<5xf32>
    %172 = vector.multi_reduction <maximumf>, %171, %cst_93 [1] : vector<5x5xf32> to vector<5xf32>
    %173 = vector.shape_cast %172 : vector<5xf32> to vector<5x1xf32>
    %174 = vector.broadcast %173 : vector<5x1xf32> to vector<5x5xf32>
    %175 = arith.subf %171, %174 : vector<5x5xf32>
    %176 = math.exp %175 : vector<5x5xf32>
    %cst_94 = arith.constant dense<0.000000e+00> : vector<5xf32>
    %177 = vector.multi_reduction <add>, %176, %cst_94 [1] : vector<5x5xf32> to vector<5xf32>
    %178 = vector.shape_cast %177 : vector<5xf32> to vector<5x1xf32>
    %179 = tpu.reciprocal %178 {approx = true} : vector<5x1xf32> -> vector<5x1xf32>
    %180 = vector.broadcast %179 : vector<5x1xf32> to vector<5x5xf32>
    %181 = arith.mulf %176, %180 : vector<5x5xf32>
    %cst_95 = arith.constant dense<0.000000e+00> : vector<5x16xf32>
    %182 = tpu.matmul %181, %168, %cst_95 {dimension_numbers = #tpu.dot_dimension_numbers<[1], [0], [0], [1], [0, 0, 1, 1], [], []>} : vector<5x5xf32>, vector<5x16xf32>, vector<5x16xf32> -> vector<5x16xf32>
    %c0_96 = arith.constant 0 : index
    %c0_97 = arith.constant 0 : index
    %183 = vector.load %arg25[%c0_96, %c0_97] : memref<5x32xf32, #tpu.memory_space<vmem>>, vector<5x16xf32>
    tpu.vector_store %arg25[%c0_96, %c0_97], %182 {strides = array<i32>} : memref<5x32xf32, #tpu.memory_space<vmem>>, vector<5x16xf32>,
    %184 = vector.extract_strided_slice %165 {offsets = [0, 16], sizes = [5, 16], strides = [1, 1]} : vector<5x96xf32> to vector<5x16xf32>
    %185 = vector.extract_strided_slice %165 {offsets = [0, 48], sizes = [5, 16], strides = [1, 1]} : vector<5x96xf32> to vector<5x16xf32>
    %186 = vector.extract_strided_slice %165 {offsets = [0, 80], sizes = [5, 16], strides = [1, 1]} : vector<5x96xf32> to vector<5x16xf32>
    %cst_98 = arith.constant dense<0.000000e+00> : vector<5x5xf32>
    %187 = tpu.matmul %184, %185, %cst_98 {dimension_numbers = #tpu.dot_dimension_numbers<[1], [1], [0], [0], [0, 0, 1, 0], [], []>} : vector<5x16xf32>, vector<5x16xf32>, vector<5x5xf32> -> vector<5x5xf32>
    %cst_99 = arith.constant 2.500000e-01 : f32
    %188 = vector.broadcast %cst_99 : f32 to vector<5x5xf32>
    %189 = arith.mulf %187, %188 : vector<5x5xf32>
    %cst_100 = arith.constant dense<0xFF800000> : vector<5xf32>
    %190 = vector.multi_reduction <maximumf>, %189, %cst_100 [1] : vector<5x5xf32> to vector<5xf32>
    %191 = vector.shape_cast %190 : vector<5xf32> to vector<5x1xf32>
    %192 = vector.broadcast %191 : vector<5x1xf32> to vector<5x5xf32>
    %193 = arith.subf %189, %192 : vector<5x5xf32>
    %194 = math.exp %193 : vector<5x5xf32>
    %cst_101 = arith.constant dense<0.000000e+00> : vector<5xf32>
    %195 = vector.multi_reduction <add>, %194, %cst_101 [1] : vector<5x5xf32> to vector<5xf32>
    %196 = vector.shape_cast %195 : vector<5xf32> to vector<5x1xf32>
    %197 = tpu.reciprocal %196 {approx = true} : vector<5x1xf32> -> vector<5x1xf32>
    %198 = vector.broadcast %197 : vector<5x1xf32> to vector<5x5xf32>
    %199 = arith.mulf %194, %198 : vector<5x5xf32>
    %cst_102 = arith.constant dense<0.000000e+00> : vector<5x16xf32>
    %200 = tpu.matmul %199, %186, %cst_102 {dimension_numbers = #tpu.dot_dimension_numbers<[1], [0], [0], [1], [0, 0, 1, 1], [], []>} : vector<5x5xf32>, vector<5x16xf32>, vector<5x16xf32> -> vector<5x16xf32>
    %c0_103 = arith.constant 0 : index
    %c16_104 = arith.constant 16 : index
    %201 = vector.load %arg25[%c0_103, %c16_104] : memref<5x32xf32, #tpu.memory_space<vmem>>, vector<5x16xf32>
    tpu.vector_store %arg25[%c0_103, %c16_104], %200 {strides = array<i32>} : memref<5x32xf32, #tpu.memory_space<vmem>>, vector<5x16xf32>,
    %c0_105 = arith.constant 0 : index
    %c0_106 = arith.constant 0 : index
    %202 = vector.load %arg25[%c0_105, %c0_106] : memref<5x32xf32, #tpu.memory_space<vmem>>, vector<5x32xf32>
    %c1_107 = arith.constant 1 : index
    %c0_108 = arith.constant 0 : index
    %c0_109 = arith.constant 0 : index
    %203 = vector.load %arg8[%c1_107, %c0_108, %c0_109] : memref<2x32x32xf32, #tpu.memory_space<vmem>>, vector<1x32x32xf32>
    %204 = vector.shape_cast %203 : vector<1x32x32xf32> to vector<32x32xf32>
    %cst_110 = arith.constant dense<0.000000e+00> : vector<5x32xf32>
    %205 = tpu.matmul %202, %204, %cst_110 {dimension_numbers = #tpu.dot_dimension_numbers<[1], [0], [0], [1], [0, 0, 1, 1], [], []>} : vector<5x32xf32>, vector<32x32xf32>, vector<5x32xf32> -> vector<5x32xf32>
    %c1_111 = arith.constant 1 : index
    %c0_112 = arith.constant 0 : index
    %c0_113 = arith.constant 0 : index
    %206 = vector.load %arg9[%c1_111, %c0_112, %c0_113] : memref<2x1x32xf32, #tpu.memory_space<vmem>>, vector<1x1x32xf32>
    %207 = vector.shape_cast %206 : vector<1x1x32xf32> to vector<1x32xf32>
    %208 = vector.broadcast %207 : vector<1x32xf32> to vector<5x32xf32>
    %209 = arith.addf %205, %208 : vector<5x32xf32>
    %210 = arith.addf %132, %209 : vector<5x32xf32>
    %c1_114 = arith.constant 1 : index
    %c0_115 = arith.constant 0 : index
    %c0_116 = arith.constant 0 : index
    %211 = vector.load %arg10[%c1_114, %c0_115, %c0_116] : memref<2x1x32xf32, #tpu.memory_space<vmem>>, vector<1x1x32xf32>
    %212 = vector.shape_cast %211 : vector<1x1x32xf32> to vector<1x32xf32>
    %c1_117 = arith.constant 1 : index
    %c0_118 = arith.constant 0 : index
    %c0_119 = arith.constant 0 : index
    %213 = vector.load %arg11[%c1_117, %c0_118, %c0_119] : memref<2x1x32xf32, #tpu.memory_space<vmem>>, vector<1x1x32xf32>
    %214 = vector.shape_cast %213 : vector<1x1x32xf32> to vector<1x32xf32>
    %cst_120 = arith.constant dense<0.000000e+00> : vector<5xf32>
    %215 = vector.multi_reduction <add>, %210, %cst_120 [1] : vector<5x32xf32> to vector<5xf32>
    %216 = vector.shape_cast %215 : vector<5xf32> to vector<5x1xf32>
    %cst_121 = arith.constant 3.200000e+01 : f32
    %217 = vector.broadcast %cst_121 : f32 to vector<5x1xf32>
    %218 = arith.divf %216, %217 : vector<5x1xf32>
    %219 = vector.broadcast %218 : vector<5x1xf32> to vector<5x32xf32>
    %220 = arith.subf %210, %219 : vector<5x32xf32>
    %221 = arith.mulf %220, %220 : vector<5x32xf32>
    %cst_122 = arith.constant dense<0.000000e+00> : vector<5xf32>
    %222 = vector.multi_reduction <add>, %221, %cst_122 [1] : vector<5x32xf32> to vector<5xf32>
    %223 = vector.shape_cast %222 : vector<5xf32> to vector<5x1xf32>
    %cst_123 = arith.constant 3.200000e+01 : f32
    %224 = vector.broadcast %cst_123 : f32 to vector<5x1xf32>
    %225 = arith.divf %223, %224 : vector<5x1xf32>
    %226 = vector.broadcast %218 : vector<5x1xf32> to vector<5x32xf32>
    %227 = arith.subf %210, %226 : vector<5x32xf32>
    %cst_124 = arith.constant 9.99999996E-13 : f32
    %228 = vector.broadcast %cst_124 : f32 to vector<5x1xf32>
    %229 = arith.addf %225, %228 : vector<5x1xf32>
    %230 = math.rsqrt %229 : vector<5x1xf32>
    %231 = vector.broadcast %230 : vector<5x1xf32> to vector<5x32xf32>
    %232 = arith.mulf %227, %231 : vector<5x32xf32>
    %233 = vector.broadcast %212 : vector<1x32xf32> to vector<5x32xf32>
    %234 = arith.mulf %232, %233 : vector<5x32xf32>
    %235 = vector.broadcast %214 : vector<1x32xf32> to vector<5x32xf32>
    %236 = arith.addf %234, %235 : vector<5x32xf32>
    %c1_125 = arith.constant 1 : index
    %c0_126 = arith.constant 0 : index
    %c0_127 = arith.constant 0 : index
    %237 = vector.load %arg12[%c1_125, %c0_126, %c0_127] : memref<2x32x64xf32, #tpu.memory_space<vmem>>, vector<1x32x64xf32>
    %238 = vector.shape_cast %237 : vector<1x32x64xf32> to vector<32x64xf32>
    %cst_128 = arith.constant dense<0.000000e+00> : vector<5x64xf32>
    %239 = tpu.matmul %236, %238, %cst_128 {dimension_numbers = #tpu.dot_dimension_numbers<[1], [0], [0], [1], [0, 0, 1, 1], [], []>} : vector<5x32xf32>, vector<32x64xf32>, vector<5x64xf32> -> vector<5x64xf32>
    %c1_129 = arith.constant 1 : index
    %c0_130 = arith.constant 0 : index
    %c0_131 = arith.constant 0 : index
    %240 = vector.load %arg13[%c1_129, %c0_130, %c0_131] : memref<2x1x64xf32, #tpu.memory_space<vmem>>, vector<1x1x64xf32>
    %241 = vector.shape_cast %240 : vector<1x1x64xf32> to vector<1x64xf32>
    %242 = vector.broadcast %241 : vector<1x64xf32> to vector<5x64xf32>
    %243 = arith.addf %239, %242 : vector<5x64xf32>
    %cst_132 = arith.constant 5.000000e-01 : f32
    %244 = vector.broadcast %cst_132 : f32 to vector<5x64xf32>
    %245 = arith.mulf %244, %243 : vector<5x64xf32>
    %cst_133 = arith.constant 0.707106769 : f32
    %246 = vector.broadcast %cst_133 : f32 to vector<5x64xf32>
    %247 = arith.mulf %243, %246 : vector<5x64xf32>
    %248 = math.erf %247 : vector<5x64xf32>
    %cst_134 = arith.constant 1.000000e+00 : f32
    %249 = vector.broadcast %cst_134 : f32 to vector<5x64xf32>
    %250 = arith.addf %249, %248 : vector<5x64xf32>
    %251 = arith.mulf %245, %250 : vector<5x64xf32>
    %c1_135 = arith.constant 1 : index
    %c0_136 = arith.constant 0 : index
    %c0_137 = arith.constant 0 : index
    %252 = vector.load %arg14[%c1_135, %c0_136, %c0_137] : memref<2x64x32xf32, #tpu.memory_space<vmem>>, vector<1x64x32xf32>
    %253 = vector.shape_cast %252 : vector<1x64x32xf32> to vector<64x32xf32>
    %cst_138 = arith.constant dense<0.000000e+00> : vector<5x32xf32>
    %254 = tpu.matmul %251, %253, %cst_138 {dimension_numbers = #tpu.dot_dimension_numbers<[1], [0], [0], [1], [0, 0, 1, 1], [], []>} : vector<5x64xf32>, vector<64x32xf32>, vector<5x32xf32> -> vector<5x32xf32>
    %255 = arith.addf %210, %254 : vector<5x32xf32>
    %c1_139 = arith.constant 1 : index
    %c0_140 = arith.constant 0 : index
    %c0_141 = arith.constant 0 : index
    %256 = vector.load %arg15[%c1_139, %c0_140, %c0_141] : memref<2x1x32xf32, #tpu.memory_space<vmem>>, vector<1x1x32xf32>
    %257 = vector.shape_cast %256 : vector<1x1x32xf32> to vector<1x32xf32>
    %258 = vector.broadcast %257 : vector<1x32xf32> to vector<5x32xf32>
    %259 = arith.addf %255, %258 : vector<5x32xf32>
    %c0_142 = arith.constant 0 : index
    %c0_143 = arith.constant 0 : index
    %260 = vector.load %arg16[%c0_142, %c0_143] : memref<1x32xf32, #tpu.memory_space<vmem>>, vector<1x32xf32>
    %c0_144 = arith.constant 0 : index
    %c0_145 = arith.constant 0 : index
    %261 = vector.load %arg17[%c0_144, %c0_145] : memref<1x32xf32, #tpu.memory_space<vmem>>, vector<1x32xf32>
    %cst_146 = arith.constant dense<0.000000e+00> : vector<5xf32>
    %262 = vector.multi_reduction <add>, %259, %cst_146 [1] : vector<5x32xf32> to vector<5xf32>
    %263 = vector.shape_cast %262 : vector<5xf32> to vector<5x1xf32>
    %cst_147 = arith.constant 3.200000e+01 : f32
    %264 = vector.broadcast %cst_147 : f32 to vector<5x1xf32>
    %265 = arith.divf %263, %264 : vector<5x1xf32>
    %266 = vector.broadcast %265 : vector<5x1xf32> to vector<5x32xf32>
    %267 = arith.subf %259, %266 : vector<5x32xf32>
    %268 = arith.mulf %267, %267 : vector<5x32xf32>
    %cst_148 = arith.constant dense<0.000000e+00> : vector<5xf32>
    %269 = vector.multi_reduction <add>, %268, %cst_148 [1] : vector<5x32xf32> to vector<5xf32>
    %270 = vector.shape_cast %269 : vector<5xf32> to vector<5x1xf32>
    %cst_149 = arith.constant 3.200000e+01 : f32
    %271 = vector.broadcast %cst_149 : f32 to vector<5x1xf32>
    %272 = arith.divf %270, %271 : vector<5x1xf32>
    %273 = vector.broadcast %265 : vector<5x1xf32> to vector<5x32xf32>
    %274 = arith.subf %259, %273 : vector<5x32xf32>
    %cst_150 = arith.constant 9.99999996E-13 : f32
    %275 = vector.broadcast %cst_150 : f32 to vector<5x1xf32>
    %276 = arith.addf %272, %275 : vector<5x1xf32>
    %277 = math.rsqrt %276 : vector<5x1xf32>
    %278 = vector.broadcast %277 : vector<5x1xf32> to vector<5x32xf32>
    %279 = arith.mulf %274, %278 : vector<5x32xf32>
    %280 = vector.broadcast %260 : vector<1x32xf32> to vector<5x32xf32>
    %281 = arith.mulf %279, %280 : vector<5x32xf32>
    %282 = vector.broadcast %261 : vector<1x32xf32> to vector<5x32xf32>
    %283 = arith.addf %281, %282 : vector<5x32xf32>
    %cst_151 = arith.constant dense<0.000000e+00> : vector<32xf32>
    %284 = vector.multi_reduction <add>, %283, %cst_151 [0] : vector<5x32xf32> to vector<32xf32>
    %285 = vector.shape_cast %284 : vector<32xf32> to vector<1x32xf32>
    %cst_152 = arith.constant 2.000000e-01 : f32
    %286 = vector.broadcast %cst_152 : f32 to vector<1x32xf32>
    %287 = arith.mulf %285, %286 : vector<1x32xf32>
    %c0_153 = arith.constant 0 : index
    %c0_154 = arith.constant 0 : index
    %288 = vector.load %arg18[%c0_153, %c0_154] : memref<32x128xf32, #tpu.memory_space<vmem>>, vector<32x128xf32>
    %cst_155 = arith.constant dense<0.000000e+00> : vector<1x128xf32>
    %289 = tpu.matmul %287, %288, %cst_155 {dimension_numbers = #tpu.dot_dimension_numbers<[1], [0], [0], [1], [0, 0, 1, 1], [], []>} : vector<1x32xf32>, vector<32x128xf32>, vector<1x128xf32> -> vector<1x128xf32>
    %c0_156 = arith.constant 0 : index
    %c0_157 = arith.constant 0 : index
    %290 = vector.load %arg19[%c0_156, %c0_157] : memref<1x128xf32, #tpu.memory_space<vmem>>, vector<1x128xf32>
    %291 = arith.addf %289, %290 : vector<1x128xf32>
    %cst_158 = arith.constant 0.000000e+00 : f32
    %292 = vector.broadcast %cst_158 : f32 to vector<1x128xf32>
    %293 = arith.maximumf %291, %292 : vector<1x128xf32>
    %c0_159 = arith.constant 0 : index
    %c0_160 = arith.constant 0 : index
    %294 = vector.load %arg20[%c0_159, %c0_160] : memref<128x64xf32, #tpu.memory_space<vmem>>, vector<128x64xf32>
    %cst_161 = arith.constant dense<0.000000e+00> : vector<1x64xf32>
    %295 = tpu.matmul %293, %294, %cst_161 {dimension_numbers = #tpu.dot_dimension_numbers<[1], [0], [0], [1], [0, 0, 1, 1], [], []>} : vector<1x128xf32>, vector<128x64xf32>, vector<1x64xf32> -> vector<1x64xf32>
    %c0_162 = arith.constant 0 : index
    %c0_163 = arith.constant 0 : index
    %296 = vector.load %arg21[%c0_162, %c0_163] : memref<1x64xf32, #tpu.memory_space<vmem>>, vector<1x64xf32>
    %297 = arith.addf %295, %296 : vector<1x64xf32>
    %cst_164 = arith.constant 0.000000e+00 : f32
    %298 = vector.broadcast %cst_164 : f32 to vector<1x64xf32>
    %299 = arith.maximumf %297, %298 : vector<1x64xf32>
    %c0_165 = arith.constant 0 : index
    %c0_166 = arith.constant 0 : index
    %300 = vector.load %arg22[%c0_165, %c0_166] : memref<64x1xf32, #tpu.memory_space<vmem>>, vector<64x1xf32>
    %cst_167 = arith.constant dense<0.000000e+00> : vector<1x1xf32>
    %301 = tpu.matmul %299, %300, %cst_167 {dimension_numbers = #tpu.dot_dimension_numbers<[1], [0], [0], [1], [0, 0, 1, 1], [], []>} : vector<1x64xf32>, vector<64x1xf32>, vector<1x1xf32> -> vector<1x1xf32>
    %c0_168 = arith.constant 0 : index
    %c0_169 = arith.constant 0 : index
    %302 = vector.load %arg23[%c0_168, %c0_169] : memref<1x1xf32, #tpu.memory_space<vmem>>, vector<1x1xf32>
    %303 = arith.addf %301, %302 : vector<1x1xf32>
    %c0_170 = arith.constant 0 : index
    %c0_171 = arith.constant 0 : index
    %c0_172 = arith.constant 0 : index
    %304 = vector.load %arg24[%c0_170, %c0_171, %c0_172] : memref<1x1x1xf32, #tpu.memory_space<vmem>>, vector<1x1x1xf32>
    %305 = vector.shape_cast %304 : vector<1x1x1xf32> to vector<1x1xf32>
    %306 = vector.shape_cast %303 : vector<1x1xf32> to vector<1x1x1xf32>
    tpu.vector_store %arg24[%c0_170, %c0_171, %c0_172], %306 {strides = array<i32>} : memref<1x1x1xf32, #tpu.memory_space<vmem>>, vector<1x1x1xf32>,
    return
  }
  func.func @transform_0(%arg0: i32) -> (i32, i32, i32) {
    %c0_i32 = arith.constant 0 : i32
    %c0_i32_0 = arith.constant 0 : i32
    %c0_i32_1 = arith.constant 0 : i32
    return %arg0, %c0_i32, %c0_i32_0 : i32, i32, i32
  }
  func.func @transform_1(%arg0: i32) -> (i32, i32) {
    %c0_i32 = arith.constant 0 : i32
    %c0_i32_0 = arith.constant 0 : i32
    %c0_i32_1 = arith.constant 0 : i32
    return %c0_i32, %c0_i32_0 : i32, i32
  }
  func.func @transform_2(%arg0: i32) -> (i32, i32) {
    %c0_i32 = arith.constant 0 : i32
    %c0_i32_0 = arith.constant 0 : i32
    %c0_i32_1 = arith.constant 0 : i32
    return %c0_i32, %c0_i32_0 : i32, i32
  }
  func.func @transform_3(%arg0: i32) -> (i32, i32, i32) {
    %c0_i32 = arith.constant 0 : i32
    %c0_i32_0 = arith.constant 0 : i32
    %c0_i32_1 = arith.constant 0 : i32
    %c0_i32_2 = arith.constant 0 : i32
    return %c0_i32, %c0_i32_0, %c0_i32_1 : i32, i32, i32
  }
  func.func @transform_4(%arg0: i32) -> (i32, i32, i32) {
    %c0_i32 = arith.constant 0 : i32
    %c0_i32_0 = arith.constant 0 : i32
    %c0_i32_1 = arith.constant 0 : i32
    %c0_i32_2 = arith.constant 0 : i32
    return %c0_i32, %c0_i32_0, %c0_i32_1 : i32, i32, i32
  }
  func.func @transform_5(%arg0: i32) -> (i32, i32, i32) {
    %c0_i32 = arith.constant 0 : i32
    %c0_i32_0 = arith.constant 0 : i32
    %c0_i32_1 = arith.constant 0 : i32
    %c0_i32_2 = arith.constant 0 : i32
    return %c0_i32, %c0_i32_0, %c0_i32_1 : i32, i32, i32
  }
  func.func @transform_6(%arg0: i32) -> (i32, i32, i32) {
    %c0_i32 = arith.constant 0 : i32
    %c0_i32_0 = arith.constant 0 : i32
    %c0_i32_1 = arith.constant 0 : i32
    %c0_i32_2 = arith.constant 0 : i32
    return %c0_i32, %c0_i32_0, %c0_i32_1 : i32, i32, i32
  }
  func.func @transform_7(%arg0: i32) -> (i32, i32, i32) {
    %c0_i32 = arith.constant 0 : i32
    %c0_i32_0 = arith.constant 0 : i32
    %c0_i32_1 = arith.constant 0 : i32
    %c0_i32_2 = arith.constant 0 : i32
    return %c0_i32, %c0_i32_0, %c0_i32_1 : i32, i32, i32
  }
  func.func @transform_8(%arg0: i32) -> (i32, i32, i32) {
    %c0_i32 = arith.constant 0 : i32
    %c0_i32_0 = arith.constant 0 : i32
    %c0_i32_1 = arith.constant 0 : i32
    %c0_i32_2 = arith.constant 0 : i32
    return %c0_i32, %c0_i32_0, %c0_i32_1 : i32, i32, i32
  }
  func.func @transform_9(%arg0: i32) -> (i32, i32, i32) {
    %c0_i32 = arith.constant 0 : i32
    %c0_i32_0 = arith.constant 0 : i32
    %c0_i32_1 = arith.constant 0 : i32
    %c0_i32_2 = arith.constant 0 : i32
    return %c0_i32, %c0_i32_0, %c0_i32_1 : i32, i32, i32
  }
  func.func @transform_10(%arg0: i32) -> (i32, i32, i32) {
    %c0_i32 = arith.constant 0 : i32
    %c0_i32_0 = arith.constant 0 : i32
    %c0_i32_1 = arith.constant 0 : i32
    %c0_i32_2 = arith.constant 0 : i32
    return %c0_i32, %c0_i32_0, %c0_i32_1 : i32, i32, i32
  }
  func.func @transform_11(%arg0: i32) -> (i32, i32, i32) {
    %c0_i32 = arith.constant 0 : i32
    %c0_i32_0 = arith.constant 0 : i32
    %c0_i32_1 = arith.constant 0 : i32
    %c0_i32_2 = arith.constant 0 : i32
    return %c0_i32, %c0_i32_0, %c0_i32_1 : i32, i32, i32
  }
  func.func @transform_12(%arg0: i32) -> (i32, i32, i32) {
    %c0_i32 = arith.constant 0 : i32
    %c0_i32_0 = arith.constant 0 : i32
    %c0_i32_1 = arith.constant 0 : i32
    %c0_i32_2 = arith.constant 0 : i32
    return %c0_i32, %c0_i32_0, %c0_i32_1 : i32, i32, i32
  }
  func.func @transform_13(%arg0: i32) -> (i32, i32, i32) {
    %c0_i32 = arith.constant 0 : i32
    %c0_i32_0 = arith.constant 0 : i32
    %c0_i32_1 = arith.constant 0 : i32
    %c0_i32_2 = arith.constant 0 : i32
    return %c0_i32, %c0_i32_0, %c0_i32_1 : i32, i32, i32
  }
  func.func @transform_14(%arg0: i32) -> (i32, i32, i32) {
    %c0_i32 = arith.constant 0 : i32
    %c0_i32_0 = arith.constant 0 : i32
    %c0_i32_1 = arith.constant 0 : i32
    %c0_i32_2 = arith.constant 0 : i32
    return %c0_i32, %c0_i32_0, %c0_i32_1 : i32, i32, i32
  }
  func.func @transform_15(%arg0: i32) -> (i32, i32) {
    %c0_i32 = arith.constant 0 : i32
    %c0_i32_0 = arith.constant 0 : i32
    %c0_i32_1 = arith.constant 0 : i32
    return %c0_i32, %c0_i32_0 : i32, i32
  }
  func.func @transform_16(%arg0: i32) -> (i32, i32) {
    %c0_i32 = arith.constant 0 : i32
    %c0_i32_0 = arith.constant 0 : i32
    %c0_i32_1 = arith.constant 0 : i32
    return %c0_i32, %c0_i32_0 : i32, i32
  }
  func.func @transform_17(%arg0: i32) -> (i32, i32) {
    %c0_i32 = arith.constant 0 : i32
    %c0_i32_0 = arith.constant 0 : i32
    %c0_i32_1 = arith.constant 0 : i32
    return %c0_i32, %c0_i32_0 : i32, i32
  }
  func.func @transform_18(%arg0: i32) -> (i32, i32) {
    %c0_i32 = arith.constant 0 : i32
    %c0_i32_0 = arith.constant 0 : i32
    %c0_i32_1 = arith.constant 0 : i32
    return %c0_i32, %c0_i32_0 : i32, i32
  }
  func.func @transform_19(%arg0: i32) -> (i32, i32) {
    %c0_i32 = arith.constant 0 : i32
    %c0_i32_0 = arith.constant 0 : i32
    %c0_i32_1 = arith.constant 0 : i32
    return %c0_i32, %c0_i32_0 : i32, i32
  }
  func.func @transform_20(%arg0: i32) -> (i32, i32) {
    %c0_i32 = arith.constant 0 : i32
    %c0_i32_0 = arith.constant 0 : i32
    %c0_i32_1 = arith.constant 0 : i32
    return %c0_i32, %c0_i32_0 : i32, i32
  }
  func.func @transform_21(%arg0: i32) -> (i32, i32) {
    %c0_i32 = arith.constant 0 : i32
    %c0_i32_0 = arith.constant 0 : i32
    %c0_i32_1 = arith.constant 0 : i32
    return %c0_i32, %c0_i32_0 : i32, i32
  }
  func.func @transform_22(%arg0: i32) -> (i32, i32) {
    %c0_i32 = arith.constant 0 : i32
    %c0_i32_0 = arith.constant 0 : i32
    %c0_i32_1 = arith.constant 0 : i32
    return %c0_i32, %c0_i32_0 : i32, i32
  }
  func.func @transform_23(%arg0: i32) -> (i32, i32, i32) {
    %c0_i32 = arith.constant 0 : i32
    %c0_i32_0 = arith.constant 0 : i32
    %c0_i32_1 = arith.constant 0 : i32
    return %arg0, %c0_i32, %c0_i32_0 : i32, i32, i32
  }
}

</mosaic_0001>

<bundles_post_ra>
// kernel: vit_forward.1
= control target key start
LH: loop header
LB: loop body
LE: loop exit
PB: predicated region body
PF: predicated region fallthrough
CT: control target
= control target key end

     0   :  { %s3230_s24 = smov 0   ;;  %s3814_s0 = inlined_call_operand.vmem [shape: f32[2,5,192], index: 0, kind: input, shape index: {}]   ;;  %s3815_s1 = inlined_call_operand.vmem [shape: f32[5,32], index: 1, kind: input, shape index: {}]   ;;  %s3816_s2 = inlined_call_operand.vmem [shape: f32[192,32], index: 2, kind: input, shape index: {}]   ;;  %s3817_s3 = inlined_call_operand.vmem [shape: f32[2,1,32], index: 3, kind: input, shape index: {}]   ;;  %s3818_s4 = inlined_call_operand.vmem [shape: f32[2,1,32], index: 4, kind: input, shape index: {}]   ;;  %s3819_s5 = inlined_call_operand.vmem [shape: f32[2,32,96], index: 5, kind: input, shape index: {}]   ;;  %s3820_s6 = inlined_call_operand.vmem [shape: f32[2,1,96], index: 6, kind: input, shape index: {}]   ;;  %s3821_s7 = inlined_call_operand.vmem [shape: f32[2,32,32], index: 7, kind: input, shape index: {}]   ;;  %s3822_s8 = inlined_call_operand.vmem [shape: f32[2,1,32], index: 8, kind: input, shape index: {}]   ;;  %s3823_s9 = inlined_call_operand.vmem [shape: f32[2,1,32], index: 9, kind: input, shape index: {}]   ;;  %s3824_s10 = inlined_call_operand.vmem [shape: f32[2,1,32], index: 10, kind: input, shape index: {}]   ;;  %s3825_s11 = inlined_call_operand.vmem [shape: f32[2,32,64], index: 11, kind: input, shape index: {}]   ;;  %s3826_s12 = inlined_call_operand.vmem [shape: f32[2,1,64], index: 12, kind: input, shape index: {}]   ;;  %s3827_s13 = inlined_call_operand.vmem [shape: f32[2,64,32], index: 13, kind: input, shape index: {}]   ;;  %s3828_s14 = inlined_call_operand.vmem [shape: f32[2,1,32], index: 14, kind: input, shape index: {}]   ;;  %s3829_s15 = inlined_call_operand.vmem [shape: f32[1,32], index: 15, kind: input, shape index: {}]   ;;  %s3830_s16 = inlined_call_operand.vmem [shape: f32[1,32], index: 16, kind: input, shape index: {}]   ;;  %s3831_s17 = inlined_call_operand.vmem [shape: f32[32,128], index: 17, kind: input, shape index: {}]   ;;  %s3832_s18 = inlined_call_operand.vmem [shape: f32[1,128], index: 18, kind: input, shape index: {}]   ;;  %s3833_s19 = inlined_call_operand.vmem [shape: f32[128,64], index: 19, kind: input, shape index: {}]   ;;  %s3834_s20 = inlined_call_operand.vmem [shape: f32[1,64], index: 20, kind: input, shape index: {}]   ;;  %s3835_s21 = inlined_call_operand.vmem [shape: f32[64,1], index: 21, kind: input, shape index: {}]   ;;  %s3836_s22 = inlined_call_operand.<no memory space> [shape: f32[1,1], index: 22, kind: input, shape index: {}]   ;;  %s3837_s23 = inlined_call_operand.vmem [shape: f32[2,1,1], index: 23, kind: output, shape index: {}]  }
   0x1   :  { %3850 = sst [smem:[#allocation4_spill]] %s3814_s0  ;;  %v28_v0 = vstv %s3836_s22 }
   0x2   :  { %3851 = sst [smem:[#allocation5_spill]] %s3815_s1  ;;  %29 = vst [vmem:[#allocation3] sm:$0x1] %v28_v0 }
   0x3   :  { %3852 = sst [smem:[#allocation6_spill]] %s3816_s2 }
   0x4   :  { %3853 = sst [smem:[#allocation7_spill]] %s3817_s3 }
   0x5   :  { %3854 = sst [smem:[#allocation8_spill]] %s3818_s4 }
   0x6   :  { %3855 = sst [smem:[#allocation9_spill]] %s3819_s5 }
   0x7   :  { %3856 = sst [smem:[#allocation10_spill]] %s3820_s6 }
   0x8   :  { %3857 = sst [smem:[#allocation11_spill]] %s3821_s7 }
   0x9 LB: > { %s2658_s25 = sadd.s32 4294967295, %s3097_s24   ;;  %p2662_p0 = scmp.ge.s32.totalorder %s3097_s24, 1  ;;  %s3097_s24 = sphi %s3230_s24, %s35_s24  }
   0xa   : > { %p639_p1 = scmp.lt.s32.totalorder %s3097_s24, 3 }
   0xc   : > { %p640_p2 = pnand %p2662_p0, %p639_p1 }
   0xd   : > { %s3858_s26 = sld [smem:[#allocation6_spill]] (!%p640_p2)  ;;  %p701_p3 = scmp.lt.s32.totalorder (!%p640_p2), %s2658_s25, 1 }
   0xe   : > { %643 = sbr.rel (%p640_p2) target bundleno = 6413 (0x190d), region = 112  ;;  %s3859_s4 = sld [smem:[#allocation4_spill]] (!%p640_p2) }
   0xf   : > { %s3861_s29 = sld [smem:[#allocation9_spill]] (!%p640_p2)  ;;  %s3844_s5 = smov (!%p640_p2), 64  }
  0x10   : > { %s3862_s27 = sld [smem:[#allocation7_spill]] (!%p640_p2)  ;;  %s3847_s1 = smov (!%p640_p2), 96  }
  0x11   : > { %s3863_s28 = sld [smem:[#allocation8_spill]] (!%p640_p2)  ;;  %s3848_s22 = smov (!%p640_p2), 80  }
  0x12   : > { %s3846_s2 = smov (!%p640_p2), 112   ;;  %s3845_s6 = smov (!%p640_p2), 48  }
  0x13   : > { %v726_v1 = vld [vmem:[%s3858_s26 + $0x78] sm:$0xff]  ;;  %v3099_v2 = vmov 0.0   ;;  %v725_v3 = vld [vmem:[%s3858_s26 + $0x70] sm:$0xff]  ;;  %s3873_s25 = smov (!%p701_p3, %s2658_s25), 1  ;;  %v724_v4 = vld [vmem:[%s3858_s26 + $0x68] sm:$0xff]  ;;  %vm736_vm0 = vcmask 523264  }
  0x14   : > { %740 = vmatprep.subr.mxu0 %v3099_v2  ;;  %2836 = vmatprep.subr.mxu1 %v3099_v2  ;;  %s2740_s7 = sshll.u32 %s3873_s25, 4  ;;  %v723_v5 = vld [vmem:[%s3858_s26 + $0x60] sm:$0xff]  ;;  %v722_v6 = vld [vmem:[%s3858_s26 + $0x58] sm:$0xff]  ;;  %v721_v8 = vld [vmem:[%s3858_s26 + $0x50] sm:$0xff]  ;;  %vm812_vm1 = vcmask 258048   ;;  %vm3100_vm2 = vmmov 0  }
  0x15   : > { %741 = vmatpush1.msra.mxu0 %v726_v1  ;;  %s3260_s30 = scalar_lea.vmem %s3859_s4, %s2740_s7  ;;  %v720_v9 = vld [vmem:[%s3858_s26 + $0x48] sm:$0xff]  ;;  %v719_v10 = vld [vmem:[%s3858_s26 + $0x40] sm:$0xff]  ;;  %v718_v11 = vld [vmem:[%s3858_s26 + $0x38] sm:$0xff]  ;;  %s3860_s7 = sld [smem:[#allocation5_spill]]  ;;  %2844 = vmatprep.mubr.msk.f32.mxu1 %vm3100_vm2, %v3099_v2  ;;  %vm852_vm3 = vcmask 261120   ;;  %vm929_vm4 = vcmask 130048  }
  0x16   : > { %742 = vmatprep.subr.mxu0 %v3099_v2  ;;  %v710_v7 = vld [vmem:[%s3260_s30 + $0x8] sm:$0x1f]  ;;  %v717_v12 = vld [vmem:[%s3858_s26 + $0x30] sm:$0xff]  ;;  %v715_v14 = vld [vmem:[%s3858_s26 + $0x20] sm:$0xff]  ;;  %s3864_s4 = sld [smem:[#allocation10_spill]]  ;;  %vm1023_vm5 = vcmask 1044480  }
  0x17   : > { %743 = vmatpush1.msra.mxu0 %v725_v3  ;;  %2665 = vmatprep.mubr.msk.f32.mxu0 %vm736_vm0, %v710_v7  ;;  %v716_v13 = vld [vmem:[%s3858_s26 + $0x28] sm:$0xff]  ;;  %v714_v15 = vld [vmem:[%s3858_s26 + $0x18] sm:$0xff]  ;;  %v713_v16 = vld [vmem:[%s3858_s26 + $0x10] sm:$0xff]  ;;  %vm1005_vm6 = vcmask 36864   ;;  %vm1019_vm7 = vcmask 39936   ;;  %vm1096_vm8 = vcmask 126976  }
  0x18   : > { %744 = vmatprep.subr.mxu0 %v3099_v2  ;;  %v712_v17 = vld [vmem:[%s3858_s26 + $0x8] sm:$0xff]  ;;  %v711_v18 = vld [vmem:[%s3858_s26] sm:$0xff]  ;;  %v734_v19 = vld [vmem:[%s3858_s26 + $0xb8] sm:$0xff]  ;;  %s3865_s3 = sld [smem:[#allocation11_spill]]  ;;  %vm1269_vm9 = vcmask 258176   ;;  %vm2609_vm10 = vcmask 0  }
  0x19   : > { %745 = vmatpush1.msra.mxu0 %v724_v4  ;;  %v733_v20 = vld [vmem:[%s3858_s26 + $0xb0] sm:$0xff]  ;;  %v732_v21 = vld [vmem:[%s3858_s26 + $0xa8] sm:$0xff]  ;;  %v731_v22 = vld [vmem:[%s3858_s26 + $0xa0] sm:$0xff] }
  0x1a   : > { %746 = vmatprep.subr.mxu0 %v3099_v2  ;;  %v730_v23 = vld [vmem:[%s3858_s26 + $0x98] sm:$0xff]  ;;  %v729_v24 = vld [vmem:[%s3858_s26 + $0x90] sm:$0xff]  ;;  %v728_v25 = vld [vmem:[%s3858_s26 + $0x88] sm:$0xff] }
  0x1b   : > { %747 = vmatpush1.msra.mxu0 %v723_v5  ;;  %v727_v26 = vld [vmem:[%s3858_s26 + $0x80] sm:$0xff]  ;;  %v844_v38 = vld [vmem:[%s3861_s29 + $0x18] sm:$0xff]  ;;  %v843_v39 = vld [vmem:[%s3861_s29 + $0x10] sm:$0xff] }
  0x1c   : > { %748 = vmatprep.subr.mxu0 %v3099_v2  ;;  %v709_v27 = vld [vmem:[%s3260_s30] sm:$0x1f]  ;;  %2837 = vmatpush3.msra.mxu1 %v844_v38  ;;  %v842_v40 = vld [vmem:[%s3861_s29 + $0x8] sm:$0xff]  ;;  %s3871_s30 = smov 16  }
  0x1d   : > { %749 = vmatpush1.msra.mxu0 %v722_v6  ;;  %v735_v28 = vld [vmem:[%s3860_s7] sm:$0x1f]  ;;  %2838 = vmatprep.subr.mxu1 %v3099_v2  ;;  %s3870_s7 = smov 64  }
  0x1e   : > { %750 = vmatprep.subr.mxu0 %v3099_v2  ;;  %2839 = vmatpush3.msra.mxu1 %v843_v39  ;;  %v841_v41 = vld [vmem:[%s3861_s29] sm:$0xff] }
  0x1f   : > { %751 = vmatpush1.msra.mxu0 %v721_v8  ;;  %2840 = vmatprep.subr.mxu1 %v3099_v2  ;;  %v2666_v46 = vld [vmem:[%s3862_s27] ss:$0 sm:$0xff] }
  0x20   : > { %752 = vmatprep.subr.mxu0 %v3099_v2  ;;  %2841 = vmatpush3.msra.mxu1 %v842_v40  ;;  %v2667_v48 = vld [vmem:[%s3863_s28] ss:$0 sm:$0xff] }
  0x21   : > { %753 = vmatpush1.msra.mxu0 %v720_v9  ;;  %2842 = vmatprep.subr.mxu1 %v3099_v2  ;;  %v2668_v51 = vld [vmem:[%s3864_s4] ss:$0 sm:$0xff] }
  0x22   : > { %754 = vmatprep.subr.mxu0 %v3099_v2  ;;  %2843 = vmatpush3.msra.mxu1 %v841_v41 }
  0x23   : > { %755 = vmatpush1.msra.mxu0 %v719_v10  ;;  %2852 = vmatprep.subr.mxu1 %v3099_v2 }
  0x24   : > { %756 = vmatprep.subr.mxu0 %v3099_v2 }
  0x25   : > { %757 = vmatpush1.msra.mxu0 %v718_v11 }
  0x26   : > { %758 = vmatprep.subr.mxu0 %v3099_v2 }
  0x27   : > { %759 = vmatpush1.msra.mxu0 %v717_v12 }
  0x28   : > { %760 = vmatprep.subr.mxu0 %v3099_v2 }
  0x29   : > { %761 = vmatpush1.msra.mxu0 %v716_v13 }
  0x2a   : > { %762 = vmatprep.subr.mxu0 %v3099_v2 }
  0x2b   : > { %763 = vmatpush1.msra.mxu0 %v715_v14 }
  0x2c   : > { %764 = vmatprep.subr.mxu0 %v3099_v2 }
  0x2d   : > { %765 = vmatpush1.msra.mxu0 %v714_v15 }
  0x2e   : > { %766 = vmatprep.subr.mxu0 %v3099_v2 }
  0x2f   : > { %767 = vmatpush1.msra.mxu0 %v713_v16 }
  0x30   : > { %768 = vmatprep.subr.mxu0 %v3099_v2 }
  0x31   : > { %769 = vmatpush1.msra.mxu0 %v712_v17 }
  0x32   : > { %770 = vmatprep.subr.mxu0 %v3099_v2 }
  0x33   : > { %771 = vmatpush1.msra.mxu0 %v711_v18 }
  0x34   : > { %788 = vmatprep.subr.mxu0 %v3099_v2 }
  0x35   : > { %789 = vmatpush2.msra.mxu0 %v734_v19 }
  0x36   : > { %790 = vmatprep.subr.mxu0 %v3099_v2 }
  0x37   : > { %791 = vmatpush2.msra.mxu0 %v733_v20 }
  0x38   : > { %792 = vmatprep.subr.mxu0 %v3099_v2 }
  0x39   : > { %793 = vmatpush2.msra.mxu0 %v732_v21 }
  0x3a   : > { %794 = vmatprep.subr.mxu0 %v3099_v2 }
  0x3b   : > { %795 = vmatpush2.msra.mxu0 %v731_v22 }
  0x3c   : > { %796 = vmatprep.subr.mxu0 %v3099_v2 }
  0x3d   : > { %797 = vmatpush2.msra.mxu0 %v730_v23  ;;  %v1275_v23 = vld [vmem:[%s3865_s3 + $0x18] sm:$0xff] }
  0x3e   : > { %798 = vmatprep.subr.mxu0 %v3099_v2 }
  0x3f   : > { %799 = vmatpush2.msra.mxu0 %v729_v24  ;;  %v1274_v24 = vld [vmem:[%s3865_s3 + $0x10] sm:$0xff] }
  0x40   : > { %800 = vmatprep.subr.mxu0 %v3099_v2 }
  0x41   : > { %801 = vmatpush2.msra.mxu0 %v728_v25  ;;  %v1273_v25 = vld [vmem:[%s3865_s3 + $0x8] sm:$0xff] }
  0x42   : > { %802 = vmatprep.subr.mxu0 %v3099_v2 }
  0x43   : > { %803 = vmatpush2.msra.mxu0 %v727_v26  ;;  %v1272_v26 = vld [vmem:[%s3865_s3] sm:$0xff] }
  0x44   : > { %805 = vmatmul.mubr.f32.vlgmr.msra.gmra.mxu0 %v709_v27  ;;  %2847 = vmatprep.subr.mxu0 %v3099_v2 }
  0x45   : > { %2849 = vmatprep.mubr.msk.f32.mxu0 %vm3100_vm2, %v3099_v2 }
 0x104   : > { %v806_v29 = vpop.f32.mrf.mxu0 }
 0x105   : > { %v3350_v30 = vadd.f32 %v806_v29, %v735_v28 }
 0x106   : > { %v808_v31 = vpop.f32.mrf.mxu0 }
 0x107   : > { %v813_v32 = vsel %vm812_vm1, %v3350_v30, 0.0 }
 0x108   : > { %814 = vadd.xlane.f32.xlu0 %v813_v32  ;;  %v2678_v32 = vld [vmem:[%s3822_s8] ss:$0 sm:$0xff] }
 0x191   : > { %v815_v33 = vpop.xlane.xlu0 %814 }
 0x192   : > { %v817_v34 = vmul.f32 0.03125, %v815_v33 }
 0x194   : > { %v818_v35 = vsub.f32 %v3350_v30, %v817_v34 }
 0x196   : > { %v819_v36 = vmul.f32 %v818_v35, %v818_v35 }
 0x198   : > { %v820_v37 = vsel %vm812_vm1, %v819_v36, 0.0 }
 0x199   : > { %821 = vadd.xlane.f32.xlu0 %v820_v37 }
 0x222   : > { %v822_v42 = vpop.xlane.xlu0 %821 }
 0x223   : > { %v823_v43 = vmul.f32 0.03125, %v822_v42 }
 0x225   : > { %v824_v44 = vadd.f32 1e-12, %v823_v43  ;;  %v1389_v43 = vld [vmem:[%s3825_s11 + $0x18] sm:$0xff] }
 0x227   : > { %3061 = vrsqrt.f32 %v824_v44  ;;  %v1387_v44 = vld [vmem:[%s3825_s11 + $0x8] sm:$0xff] }
 0x234   : > { %v3062_v45 = vpop.eup %3061 }
 0x235   : > { %v826_v47 = vmul.f32 %v3062_v45, %v818_v35  ;;  %v1386_v45 = vld [vmem:[%s3825_s11] sm:$0xff] }
 0x237   : > { %v833_v49 = vmul.f32 %v2666_v46, %v826_v47 }
 0x239   : > { %v840_v50 = vadd.f32 %v2667_v48, %v833_v49 }
 0x23b   : > { %2845 = vmatmul.mubr.msk.f32.vlgmr.msra.gmra.mxu1 %vm852_vm3, %v840_v50  ;;  %v2680_v50 = vld [vmem:[%s3823_s9] ss:$0 sm:$0xff] }
 0x23c   : > { %2854 = vmatprep.mubr.msk.f32.mxu1 %vm3100_vm2, %v3099_v2 }
 0x2fb   : > { %v922_v52 = vpop.f32.mrf.mxu1 }
 0x2fc   : > { %v923_v53 = vadd.f32 %v2668_v51, %v922_v52  ;;  %v2681_v52 = vld [vmem:[%s3824_s10] ss:$0 sm:$0xff] }
 0x2fd   : > { %v2846_v54 = vpop.f32.mrf.mxu1 }
 0x2fe   : > { %1017 = vrot.lane.b32.xlu0 %v923_v53, %s3844_s5  ;;  %927 = vrot.lane.b32.xlu1 %v923_v53, %s3847_s1  ;;  %s3849_s5 = smov 16   ;;  %s3866_s1 = smov 80  }
 0x370   : > { %v1018_v55 = vpop.permute.xlu0 %1017  ;;  %v928_v56 = vpop.permute.xlu1 %927 }
 0x371   : > { %2848 = vmatpush3.xpose.msk.msra.mxu0 %vm929_vm4, %v928_v56  ;;  %2853 = vmatpush3.msk.msra.mxu1 %vm1023_vm5, %v1018_v55  ;;  %v1482_v55 = vld [vmem:[%s3827_s13 + $0x38] sm:$0xff]  ;;  %v1481_v56 = vld [vmem:[%s3827_s13 + $0x30] sm:$0xff] }
 0x372   : > { %2857 = vmatprep.subr.mxu1 %v3099_v2  ;;  %2908 = vmatprep.subr.mxu0 %v3099_v2 }
 0x374   : > { %2850 = vmatmul.mubr.msk.f32.vlgmr.msra.gmra.mxu0 %vm929_vm4, %v923_v53 }
 0x375   : > { %2916 = vmatprep.mubr.msk.f32.mxu0 %vm3100_vm2, %v3099_v2 }
 0x434   : > { %v1000_v57 = vpop.f32.mrf.mxu0 }
 0x435   : > { %v1004_v58 = vmul.f32 0.25, %v1000_v57  ;;  %v1480_v57 = vld [vmem:[%s3827_s13 + $0x28] sm:$0xff] }
 0x436   : > { %v2851_v59 = vpop.f32.mrf.mxu0 }
 0x437   : > { %v1006_v60 = vsel %vm1005_vm6, %v1004_v58, -inf  ;;  %v1478_v59 = vld [vmem:[%s3827_s13 + $0x18] sm:$0xff] }
 0x438   : > { %1007 = vmax.xlane.f32.xlu1 %v1006_v60  ;;  %v1477_v60 = vld [vmem:[%s3827_s13 + $0x10] sm:$0xff] }
 0x4c1   : > { %v1008_v61 = vpop.xlane.xlu1 %1007 }
 0x4c2   : > { %v1009_v62 = vsub.f32 %v1004_v58, %v1008_v61  ;;  %v1479_v58 = vld [vmem:[%s3827_s13 + $0x20] sm:$0xff]  ;;  %v1476_v61 = vld [vmem:[%s3827_s13 + $0x8] sm:$0xff] }
 0x4c4   : > { %v1010_v63 = vmul.f32 1.442695, %v1009_v62  ;;  %v1475_v62 = vld [vmem:[%s3827_s13] sm:$0xff] }
 0x4c6   : > { %3063 = vpow2.f32 %v1010_v63  ;;  %v2682_v63 = vld [vmem:[%s3826_s12] ss:$0 sm:$0xff] }
 0x4d3   : > { %v3064_v0 = vpop.eup %3063 }
 0x4d4   : > { %v1012_v1 = vsel %vm1005_vm6, %v3064_v0, 0.0 }
 0x4d5   : > { %1013 = vadd.xlane.f32.xlu0 %v1012_v1 }
 0x4eb   : > { %1100 = vrot.lane.b32.xlu0 %v923_v53, %s3848_s22  ;;  %s3867_s22 = smov 96  }
 0x4ef   : > { %1098 = vrot.lane.b32.xlu0 %v923_v53, %s3846_s2  ;;  %s3868_s2 = smov 112  }
 0x55e   : > { %v1014_v3 = vpop.xlane.xlu0 %1013 }
 0x55f   : > { %3065 = vrcp.f32 %v1014_v3 }
 0x562   : > { %v1101_v5 = vpop.permute.xlu0 %1100 }
 0x566   : > { %v1099_v7 = vpop.permute.xlu0 %1098 }
 0x56c   : > { %v3066_v4 = vpop.eup %3065 }
 0x56d   : > { %v1016_v6 = vmul.f32 %v3066_v4, %v3064_v0 }
 0x56f   : > { %2855 = vmatmul.mubr.msk.f32.vlgmr.msra.gmra.mxu1 %vm1019_vm7, %v1016_v6 }
 0x570   : > { %2858 = vmatpush3.xpose.msk.msra.mxu1 %vm929_vm4, %v1101_v5  ;;  %2859 = vmatprep.mubr.msk.f32.mxu1 %vm3100_vm2, %v3099_v2 }
 0x571   : > { %2862 = vmatprep.subr.mxu1 %v3099_v2 }
 0x573   : > { %2860 = vmatmul.mubr.msk.f32.vlgmr.msra.gmra.mxu1 %vm929_vm4, %v1099_v7 }
 0x574   : > { %2864 = vmatprep.mubr.msk.f32.mxu1 %vm3100_vm2, %v3099_v2 }
 0x62f   : > { %v1092_v8 = vpop.f32.mrf.mxu1 }
 0x630   : > { %1097 = vst.msk [vmem:[#allocation2] sm:$0x1f] %vm1096_vm8, %v1092_v8 }
 0x631   : > { %v2856_v9 = vpop.f32.mrf.mxu1 }
 0x633   : > { %v1172_v10 = vpop.f32.mrf.mxu1 }
 0x634   : > { %v1176_v11 = vmul.f32 0.25, %v1172_v10  ;;  %v2685_v10 = vld [vmem:[%s3828_s14] ss:$0 sm:$0xff] }
 0x635   : > { %v2861_v12 = vpop.f32.mrf.mxu1 }
 0x636   : > { %v1177_v13 = vsel %vm1005_vm6, %v1176_v11, -inf }
 0x637   : > { %1178 = vmax.xlane.f32.xlu1 %v1177_v13 }
 0x648   : > { %1188 = vrot.lane.b32.xlu1 %v923_v53, %s3845_s6  ;;  %s3869_s6 = smov 48  }
 0x6c0   : > { %v1179_v14 = vpop.xlane.xlu1 %1178 }
 0x6c1   : > { %v1180_v15 = vsub.f32 %v1176_v11, %v1179_v14 }
 0x6c3   : > { %v1181_v16 = vmul.f32 1.442695, %v1180_v15 }
 0x6c4   : > { %v1189_v17 = vpop.permute.xlu1 %1188 }
 0x6c5   : > { %3067 = vpow2.f32 %v1181_v16  ;;  %2863 = vmatpush3.msk.msra.mxu1 %vm1023_vm5, %v1189_v17 }
 0x6c6   : > { %2867 = vmatprep.subr.mxu1 %v3099_v2 }
 0x6d2   : > { %v3068_v18 = vpop.eup %3067 }
 0x6d3   : > { %v1183_v19 = vsel %vm1005_vm6, %v3068_v18, 0.0 }
 0x6d4   : > { %1184 = vadd.xlane.f32.xlu0 %v1183_v19 }
 0x75d   : > { %v1185_v20 = vpop.xlane.xlu0 %1184 }
 0x75e   : > { %3069 = vrcp.f32 %v1185_v20  ;;  %v2693_v20 = vld [vmem:[%s3861_s29 + $0x38] sm:$0xff] }
 0x75f   : > { %2909 = vmatpush3.msra.mxu0 %v2693_v20 }
 0x760   : > { %2910 = vmatprep.subr.mxu0 %v3099_v2 }
 0x76b   : > { %v3070_v21 = vpop.eup %3069 }
 0x76c   : > { %v1187_v22 = vmul.f32 %v3070_v21, %v3068_v18  ;;  %v2692_v21 = vld [vmem:[%s3861_s29 + $0x30] sm:$0xff] }
 0x76d   : > { %2911 = vmatpush3.msra.mxu0 %v2692_v21 }
 0x76e   : > { %2865 = vmatmul.mubr.msk.f32.vlgmr.msra.gmra.mxu1 %vm1019_vm7, %v1187_v22  ;;  %v2691_v22 = vld [vmem:[%s3861_s29 + $0x28] sm:$0xff]  ;;  %2912 = vmatprep.subr.mxu0 %v3099_v2 }
 0x76f   : > { %2875 = vmatprep.mubr.msk.f32.mxu1 %vm3100_vm2, %v3099_v2  ;;  %2868 = vmatpush3.msra.mxu1 %v1275_v23  ;;  %v2690_v23 = vld [vmem:[%s3861_s29 + $0x20] sm:$0xff] }
 0x770   : > { %2869 = vmatprep.subr.mxu1 %v3099_v2  ;;  %2913 = vmatpush3.msra.mxu0 %v2691_v22 }
 0x771   : > { %2870 = vmatpush3.msra.mxu1 %v1274_v24  ;;  %2914 = vmatprep.subr.mxu0 %v3099_v2 }
 0x772   : > { %2871 = vmatprep.subr.mxu1 %v3099_v2  ;;  %2915 = vmatpush3.msra.mxu0 %v2690_v23 }
 0x773   : > { %2872 = vmatpush3.msra.mxu1 %v1273_v25  ;;  %2919 = vmatprep.subr.mxu0 %v3099_v2 }
 0x774   : > { %2873 = vmatprep.subr.mxu1 %v3099_v2 }
 0x775   : > { %2874 = vmatpush3.msra.mxu1 %v1272_v26 }
 0x776   : > { %2878 = vmatprep.subr.mxu1 %v3099_v2 }
 0x82e   : > { %v1261_v27 = vpop.f32.mrf.mxu1 }
 0x82f   : > { %1266 = vrot.lane.b32.xlu1 %v1261_v27, %s3849_s5 }
 0x830   : > { %v2866_v28 = vpop.f32.mrf.mxu1 }
 0x831   : > { %v2688_v28 = vld [vmem:[%s3862_s27 + $0x1] ss:$0 sm:$0xff] }
 0x8a1   : > { %v1267_v29 = vpop.permute.xlu1 %1266 }
 0x8a2   : > { %1270 = vst.msk [vmem:[#allocation2] sm:$0x1f] %vm1269_vm9, %v1267_v29 }
 0x8a9   : > { %v1271_v31 = vld [vmem:[#allocation2] sm:$0x1f] }
 0x8aa   : > { %2876 = vmatmul.mubr.msk.f32.vlgmr.msra.gmra.mxu1 %vm852_vm3, %v1271_v31  ;;  %v2689_v31 = vld [vmem:[%s3863_s28 + $0x1] ss:$0 sm:$0xff] }
 0x8ab   : > { %2886 = vmatprep.mubr.msk.f32.mxu1 %vm3100_vm2, %v3099_v2  ;;  %2879 = vmatpush3.msra.mxu1 %v1389_v43 }
 0x8ac   : > { %2880 = vmatprep.subr.mxu1 %v3099_v2 }
 0x96a   : > { %v1352_v33 = vpop.f32.mrf.mxu1 }
 0x96b   : > { %v1353_v34 = vadd.f32 %v2678_v32, %v1352_v33 }
 0x96c   : > { %v2877_v35 = vpop.f32.mrf.mxu1 }
 0x96d   : > { %v3443_v36 = vadd.f32 %v1353_v34, %v3350_v30  ;;  %v1388_v30 = vld [vmem:[%s3825_s11 + $0x10] sm:$0xff]  ;;  %v2695_v34 = vld [vmem:[%s3864_s4 + $0x1] ss:$0 sm:$0xff] }
 0x96e   : > { %2881 = vmatpush3.msra.mxu1 %v1388_v30 }
 0x96f   : > { %v1359_v37 = vsel %vm812_vm1, %v3443_v36, 0.0  ;;  %2882 = vmatprep.subr.mxu1 %v3099_v2 }
 0x970   : > { %1360 = vadd.xlane.f32.xlu1 %v1359_v37  ;;  %2883 = vmatpush3.msra.mxu1 %v1387_v44 }
 0x971   : > { %2884 = vmatprep.subr.mxu1 %v3099_v2 }
 0x972   : > { %2885 = vmatpush3.msra.mxu1 %v1386_v45 }
 0x973   : > { %2889 = vmatprep.subr.mxu1 %v3099_v2 }
 0x9f9   : > { %v1361_v38 = vpop.xlane.xlu1 %1360 }
 0x9fa   : > { %v1362_v39 = vmul.f32 0.03125, %v1361_v38 }
 0x9fc   : > { %v1363_v40 = vsub.f32 %v3443_v36, %v1362_v39 }
 0x9fe   : > { %v1364_v41 = vmul.f32 %v1363_v40, %v1363_v40 }
 0xa00   : > { %v1365_v42 = vsel %vm812_vm1, %v1364_v41, 0.0 }
 0xa01   : > { %1366 = vadd.xlane.f32.xlu0 %v1365_v42 }
 0xa8a   : > { %v1367_v46 = vpop.xlane.xlu0 %1366 }
 0xa8b   : > { %v1368_v47 = vmul.f32 0.03125, %v1367_v46 }
 0xa8d   : > { %v1369_v48 = vadd.f32 1e-12, %v1368_v47 }
 0xa8f   : > { %3071 = vrsqrt.f32 %v1369_v48 }
 0xa9c   : > { %v3072_v49 = vpop.eup %3071 }
 0xa9d   : > { %v1371_v51 = vmul.f32 %v3072_v49, %v1363_v40 }
 0xa9f   : > { %v1378_v53 = vmul.f32 %v2680_v50, %v1371_v51 }
 0xaa1   : > { %v1385_v54 = vadd.f32 %v2681_v52, %v1378_v53 }
 0xaa3   : > { %2887 = vmatmul.mubr.msk.f32.vlgmr.msra.gmra.mxu1 %vm852_vm3, %v1385_v54 }
 0xaa4   : > { %2905 = vmatprep.mubr.msk.f32.mxu1 %vm3100_vm2, %v3099_v2  ;;  %2890 = vmatpush3.msra.mxu1 %v1482_v55 }
 0xaa5   : > { %2891 = vmatprep.subr.mxu1 %v3099_v2 }
 0xaa6   : > { %2892 = vmatpush3.msra.mxu1 %v1481_v56 }
 0xaa7   : > { %2893 = vmatprep.subr.mxu1 %v3099_v2 }
 0xaa8   : > { %2894 = vmatpush3.msra.mxu1 %v1480_v57 }
 0xaa9   : > { %2895 = vmatprep.subr.mxu1 %v3099_v2 }
 0xaaa   : > { %2896 = vmatpush3.msra.mxu1 %v1479_v58 }
 0xaab   : > { %2897 = vmatprep.subr.mxu1 %v3099_v2 }
 0xaac   : > { %2898 = vmatpush3.msra.mxu1 %v1478_v59 }
 0xaad   : > { %2899 = vmatprep.subr.mxu1 %v3099_v2 }
 0xaae   : > { %2900 = vmatpush3.msra.mxu1 %v1477_v60 }
 0xaaf   : > { %2901 = vmatprep.subr.mxu1 %v3099_v2 }
 0xab0   : > { %2902 = vmatpush3.msra.mxu1 %v1476_v61 }
 0xab1   : > { %2903 = vmatprep.subr.mxu1 %v3099_v2 }
 0xab2   : > { %2904 = vmatpush3.msra.mxu1 %v1475_v62 }
 0xab3   : > { %2924 = vmatprep.subr.mxu1 %v3099_v2 }
 0xb63   : > { %v1466_v0 = vpop.f32.mrf.mxu1 }
 0xb64   : > { %v1467_v1 = vadd.f32 %v2682_v63, %v1466_v0 }
 0xb65   : > { %v2888_v3 = vpop.f32.mrf.mxu1 }
 0xb66   : > { %v1471_v4 = vmul.f32 0.70710677, %v1467_v1  ;;  %v1470_v6 = vmul.f32 0.5, %v1467_v1  ;;  %v2708_v3 = vld [vmem:[%s3865_s3 + $0x38] sm:$0xff] }
 0xb68   : > { %3073 = verf.f32 %v1471_v4  ;;  %v2707_v4 = vld [vmem:[%s3865_s3 + $0x30] sm:$0xff] }
 0xb75   : > { %v3074_v5 = vpop.eup %3073 }
 0xb76   : > { %v1473_v7 = vadd.f32 1.0, %v3074_v5  ;;  %v2706_v5 = vld [vmem:[%s3865_s3 + $0x28] sm:$0xff] }
 0xb78   : > { %v1474_v8 = vmul.f32 %v1473_v7, %v1470_v6  ;;  %v2705_v6 = vld [vmem:[%s3865_s3 + $0x20] sm:$0xff] }
 0xb7a   : > { %2906 = vmatmul.mubr.msk.f32.vlgmr.msra.gmra.mxu1 %vm736_vm0, %v1474_v8 }
 0xb7b   : > { %2926 = vmatprep.mubr.msk.f32.mxu1 %vm3100_vm2, %v3099_v2 }
 0xc3a   : > { %v1552_v9 = vpop.f32.mrf.mxu1 }
 0xc3b   : > { %v1556_v11 = vadd.f32 %v1552_v9, %v3443_v36 }
 0xc3c   : > { %v2907_v12 = vpop.f32.mrf.mxu1 }
 0xc3d   : > { %v3516_v13 = vadd.f32 %v2685_v10, %v1556_v11 }
 0xc3f   : > { %v1569_v14 = vsel %vm812_vm1, %v3516_v13, 0.0 }
 0xc40   : > { %1570 = vadd.xlane.f32.xlu0 %v1569_v14  ;;  %v2710_v14 = vld [vmem:[%s3822_s8 + $0x1] ss:$0 sm:$0xff] }
 0xcc9   : > { %v1571_v15 = vpop.xlane.xlu0 %1570 }
 0xcca   : > { %v1572_v16 = vmul.f32 0.03125, %v1571_v15 }
 0xccc   : > { %v1573_v17 = vsub.f32 %v3516_v13, %v1572_v16 }
 0xcce   : > { %v1574_v18 = vmul.f32 %v1573_v17, %v1573_v17 }
 0xcd0   : > { %v1575_v19 = vsel %vm812_vm1, %v1574_v18, 0.0 }
 0xcd1   : > { %1576 = vadd.xlane.f32.xlu0 %v1575_v19 }
 0xd5a   : > { %v1577_v24 = vpop.xlane.xlu0 %1576 }
 0xd5b   : > { %v1578_v25 = vmul.f32 0.03125, %v1577_v24 }
 0xd5d   : > { %v1579_v26 = vadd.f32 1e-12, %v1578_v25  ;;  %v2719_v25 = vld [vmem:[%s3825_s11 + $0x38] sm:$0xff] }
 0xd5f   : > { %3075 = vrsqrt.f32 %v1579_v26  ;;  %v2717_v26 = vld [vmem:[%s3825_s11 + $0x28] sm:$0xff] }
 0xd6c   : > { %v3076_v27 = vpop.eup %3075 }
 0xd6d   : > { %v1581_v29 = vmul.f32 %v3076_v27, %v1573_v17  ;;  %v2716_v27 = vld [vmem:[%s3825_s11 + $0x20] sm:$0xff] }
 0xd6f   : > { %v1588_v32 = vmul.f32 %v2688_v28, %v1581_v29 }
 0xd71   : > { %v1595_v33 = vadd.f32 %v2689_v31, %v1588_v32 }
 0xd73   : > { %2917 = vmatmul.mubr.msk.f32.vlgmr.msra.gmra.mxu0 %vm852_vm3, %v1595_v33  ;;  %v2714_v33 = vld [vmem:[%s3823_s9 + $0x1] ss:$0 sm:$0xff] }
 0xd74   : > { %2921 = vmatprep.mubr.msk.f32.mxu0 %vm3100_vm2, %v3099_v2 }
 0xe33   : > { %v1678_v35 = vpop.f32.mrf.mxu0 }
 0xe34   : > { %v1679_v36 = vadd.f32 %v2695_v34, %v1678_v35  ;;  %v2715_v35 = vld [vmem:[%s3824_s10 + $0x1] ss:$0 sm:$0xff] }
 0xe35   : > { %v2918_v37 = vpop.f32.mrf.mxu0 }
 0xe36   : > { %1851 = vrot.lane.b32.xlu1 %v1679_v36, %s3866_s1  ;;  %1683 = vrot.lane.b32.xlu0 %v1679_v36, %s3867_s22 }
 0xe3a   : > { %1849 = vrot.lane.b32.xlu0 %v1679_v36, %s3868_s2  ;;  %s708_s2 = scalar_lea.vmem %s3837_s23, %s3873_s25 }
 0xea8   : > { %v1684_v38 = vpop.permute.xlu0 %1683  ;;  %v1852_v39 = vpop.permute.xlu1 %1851 }
 0xea9   : > { %2920 = vmatpush3.xpose.msk.msra.mxu0 %vm929_vm4, %v1684_v38  ;;  %v2730_v38 = vld [vmem:[%s3827_s13 + $0x78] sm:$0xff] }
 0xeaa   : > { %2929 = vmatprep.subr.mxu0 %v3099_v2 }
 0xeac   : > { %2922 = vmatmul.mubr.msk.f32.vlgmr.msra.gmra.mxu0 %vm929_vm4, %v1679_v36  ;;  %v1850_v40 = vpop.permute.xlu0 %1849 }
 0xead   : > { %2930 = vmatpush3.xpose.msk.msra.mxu0 %vm929_vm4, %v1852_v39  ;;  %2931 = vmatprep.mubr.msk.f32.mxu0 %vm3100_vm2, %v3099_v2  ;;  %v2729_v39 = vld [vmem:[%s3827_s13 + $0x70] sm:$0xff] }
 0xeae   : > { %2939 = vmatprep.subr.mxu0 %v3099_v2 }
 0xeb0   : > { %2932 = vmatmul.mubr.msk.f32.vlgmr.msra.gmra.mxu0 %vm929_vm4, %v1850_v40  ;;  %v2728_v40 = vld [vmem:[%s3827_s13 + $0x68] sm:$0xff] }
 0xeb1   : > { %2947 = vmatprep.mubr.msk.f32.mxu0 %vm3100_vm2, %v3099_v2  ;;  %2940 = vmatpush3.msra.mxu0 %v2708_v3  ;;  %v2362_v3 = vld [vmem:[%s3831_s17 + $0x10] sm:$0xff] }
 0xeb2   : > { %2941 = vmatprep.subr.mxu0 %v3099_v2 }
 0xeb3   : > { %2942 = vmatpush3.msra.mxu0 %v2707_v4  ;;  %v2361_v4 = vld [vmem:[%s3831_s17 + $0x8] sm:$0xff] }
 0xeb4   : > { %2943 = vmatprep.subr.mxu0 %v3099_v2 }
 0xeb5   : > { %2944 = vmatpush3.msra.mxu0 %v2706_v5  ;;  %v2360_v5 = vld [vmem:[%s3831_s17] sm:$0xff] }
 0xeb6   : > { %2945 = vmatprep.subr.mxu0 %v3099_v2 }
 0xeb7   : > { %2946 = vmatpush3.msra.mxu0 %v2705_v6 }
 0xeb8   : > { %2961 = vmatprep.subr.mxu0 %v3099_v2 }
 0xf6c   : > { %v1755_v41 = vpop.f32.mrf.mxu0 }
 0xf6d   : > { %v1759_v42 = vmul.f32 0.25, %v1755_v41  ;;  %v2727_v41 = vld [vmem:[%s3827_s13 + $0x60] sm:$0xff] }
 0xf6e   : > { %v2923_v43 = vpop.f32.mrf.mxu0 }
 0xf6f   : > { %v1760_v30 = vsel %vm1005_vm6, %v1759_v42, -inf  ;;  %v2725_v43 = vld [vmem:[%s3827_s13 + $0x50] sm:$0xff] }
 0xf70   : > { %1761 = vmax.xlane.f32.xlu0 %v1760_v30  ;;  %v1923_v44 = vpop.f32.mrf.mxu0  ;;  %v2724_v30 = vld [vmem:[%s3827_s13 + $0x48] sm:$0xff] }
 0xf71   : > { %v1927_v45 = vmul.f32 0.25, %v1923_v44  ;;  %v2723_v44 = vld [vmem:[%s3827_s13 + $0x40] sm:$0xff] }
 0xf72   : > { %v2933_v46 = vpop.f32.mrf.mxu0 }
 0xf73   : > { %v1928_v47 = vsel %vm1005_vm6, %v1927_v45, -inf }
 0xf74   : > { %1929 = vmax.xlane.f32.xlu1 %v1928_v47 }
 0xf85   : > { %1939 = vrot.lane.b32.xlu1 %v1679_v36, %s3869_s6 }
 0xff9   : > { %v1762_v48 = vpop.xlane.xlu0 %1761 }
 0xffa   : > { %v1763_v49 = vsub.f32 %v1759_v42, %v1762_v48  ;;  %v2726_v42 = vld [vmem:[%s3827_s13 + $0x58] sm:$0xff] }
 0xffc   : > { %v1764_v50 = vmul.f32 1.442695, %v1763_v49 }
 0xffd   : > { %v1930_v51 = vpop.xlane.xlu1 %1929 }
 0xffe   : > { %3077 = vpow2.f32 %v1764_v50  ;;  %v1931_v52 = vsub.f32 %v1927_v45, %v1930_v51  ;;  %v2721_v45 = vld [vmem:[%s3826_s12 + $0x1] ss:$0 sm:$0xff] }
0x1000   : > { %v1932_v53 = vmul.f32 1.442695, %v1931_v52 }
0x1001   : > { %v1940_v63 = vpop.permute.xlu1 %1939 }
0x1002   : > { %3079 = vpow2.f32 %v1932_v53 }
0x100b   : > { %v3078_v54 = vpop.eup %3077 }
0x100c   : > { %v1766_v55 = vsel %vm1005_vm6, %v3078_v54, 0.0 }
0x100d   : > { %1767 = vadd.xlane.f32.xlu0 %v1766_v55  ;;  %v2733_v55 = vld [vmem:[%s3828_s14 + $0x1] ss:$0 sm:$0xff] }
0x100f   : > { %v3080_v56 = vpop.eup %3079 }
0x1010   : > { %v1934_v57 = vsel %vm1005_vm6, %v3080_v56, 0.0 }
0x1011   : > { %1935 = vadd.xlane.f32.xlu0 %v1934_v57 }
0x1027   : > { %1771 = vrot.lane.b32.xlu0 %v1679_v36, %s3870_s7 }
0x1096   : > { %v1768_v58 = vpop.xlane.xlu0 %1767 }
0x1097   : > { %3081 = vrcp.f32 %v1768_v58 }
0x109a   : > { %v1936_v59 = vpop.xlane.xlu0 %1935 }
0x109b   : > { %3083 = vrcp.f32 %v1936_v59 }
0x109e   : > { %v1772_v60 = vpop.permute.xlu0 %1771 }
0x109f   : > { %2925 = vmatpush3.msk.msra.mxu1 %vm1023_vm5, %v1772_v60 }
0x10a0   : > { %2934 = vmatprep.subr.mxu1 %v3099_v2 }
0x10a4   : > { %v3082_v61 = vpop.eup %3081 }
0x10a5   : > { %v1770_v62 = vmul.f32 %v3082_v61, %v3078_v54 }
0x10a7   : > { %2927 = vmatmul.mubr.msk.f32.vlgmr.msra.gmra.mxu1 %vm1019_vm7, %v1770_v62 }
0x10a8   : > { %v3084_v0 = vpop.eup %3083  ;;  %2935 = vmatpush3.msk.msra.mxu1 %vm1023_vm5, %v1940_v63  ;;  %2936 = vmatprep.mubr.msk.f32.mxu1 %vm3100_vm2, %v3099_v2 }
0x10a9   : > { %v1938_v1 = vmul.f32 %v3084_v0, %v3080_v56  ;;  %2950 = vmatprep.subr.mxu1 %v3099_v2 }
0x10ab   : > { %2937 = vmatmul.mubr.msk.f32.vlgmr.msra.gmra.mxu1 %vm1019_vm7, %v1938_v1  ;;  %v2363_v1 = vld [vmem:[%s3831_s17 + $0x18] sm:$0xff] }
0x10ac   : > { %2958 = vmatprep.mubr.msk.f32.mxu1 %vm3100_vm2, %v3099_v2  ;;  %2951 = vmatpush3.msra.mxu1 %v2719_v25  ;;  %v2453_v25 = vld [vmem:[%s3833_s19 + $0x70] sm:$0xff] }
0x10ad   : > { %2952 = vmatprep.subr.mxu1 %v3099_v2 }
0x1167   : > { %v1844_v7 = vpop.f32.mrf.mxu1 }
0x1168   : > { %1848 = vst.msk [vmem:[#allocation2] sm:$0x1f] %vm1096_vm8, %v1844_v7 }
0x1169   : > { %v2928_v8 = vpop.f32.mrf.mxu1 }
0x116b   : > { %v2012_v9 = vpop.f32.mrf.mxu1 }
0x116c   : > { %2017 = vrot.lane.b32.xlu1 %v2012_v9, %s3871_s30 }
0x116d   : > { %v2938_v10 = vpop.f32.mrf.mxu1 }
0x116e   : > { %v2734_v10 = vld [vmem:[%s3829_s15] ss:$0 sm:$0xff] }
0x11de   : > { %v2018_v11 = vpop.permute.xlu1 %2017 }
0x11df   : > { %2020 = vst.msk [vmem:[#allocation2] sm:$0x1f] %vm1269_vm9, %v2018_v11 }
0x11e6   : > { %v2021_v12 = vld [vmem:[#allocation2] sm:$0x1f] }
0x11e7   : > { %2948 = vmatmul.mubr.msk.f32.vlgmr.msra.gmra.mxu0 %vm852_vm3, %v2021_v12  ;;  %v2735_v12 = vld [vmem:[%s3830_s16] ss:$0 sm:$0xff] }
0x11e8   : > { %2977 = vmatprep.mubr.msk.f32.mxu0 %vm3100_vm2, %v3099_v2  ;;  %2962 = vmatpush3.msra.mxu0 %v2730_v38  ;;  %v2440_v38 = vld [vmem:[%s3833_s19 + $0x8] sm:$0xff] }
0x11e9   : > { %2963 = vmatprep.subr.mxu0 %v3099_v2 }
0x11ea   : > { %2964 = vmatpush3.msra.mxu0 %v2729_v39  ;;  %v2439_v39 = vld [vmem:[%s3833_s19] sm:$0xff] }
0x11eb   : > { %2965 = vmatprep.subr.mxu0 %v3099_v2 }
0x11ec   : > { %2966 = vmatpush3.msra.mxu0 %v2728_v40  ;;  %v2534_v40 = vld [vmem:[%s3835_s21 + $0x38] sm:$0xff] }
0x11ed   : > { %2967 = vmatprep.subr.mxu0 %v3099_v2 }
0x11ee   : > { %2968 = vmatpush3.msra.mxu0 %v2727_v41  ;;  %v2533_v41 = vld [vmem:[%s3835_s21 + $0x30] sm:$0xff] }
0x11ef   : > { %2969 = vmatprep.subr.mxu0 %v3099_v2 }
0x11f0   : > { %2970 = vmatpush3.msra.mxu0 %v2726_v42  ;;  %v2532_v42 = vld [vmem:[%s3835_s21 + $0x28] sm:$0xff] }
0x11f1   : > { %2971 = vmatprep.subr.mxu0 %v3099_v2 }
0x11f2   : > { %2972 = vmatpush3.msra.mxu0 %v2725_v43  ;;  %v2531_v43 = vld [vmem:[%s3835_s21 + $0x20] sm:$0xff] }
0x11f3   : > { %2973 = vmatprep.subr.mxu0 %v3099_v2 }
0x11f4   : > { %2974 = vmatpush3.msra.mxu0 %v2724_v30  ;;  %v2530_v30 = vld [vmem:[%s3835_s21 + $0x18] sm:$0xff] }
0x11f5   : > { %2975 = vmatprep.subr.mxu0 %v3099_v2 }
0x11f6   : > { %2976 = vmatpush3.msra.mxu0 %v2723_v44  ;;  %v2364_v44 = vld [vmem:[%s3832_s18] sm:$0x1] }
0x11f7   : > { %3026 = vmatprep.subr.mxu0 %v3099_v2 }
0x12a7   : > { %v2104_v15 = vpop.f32.mrf.mxu0 }
0x12a8   : > { %v2105_v16 = vadd.f32 %v2710_v14, %v2104_v15 }
0x12a9   : > { %v2949_v17 = vpop.f32.mrf.mxu0 }
0x12aa   : > { %v3605_v18 = vadd.f32 %v2105_v16, %v3516_v13  ;;  %v2718_v13 = vld [vmem:[%s3825_s11 + $0x30] sm:$0xff] }
0x12ab   : > { %2953 = vmatpush3.msra.mxu1 %v2718_v13  ;;  %v2452_v13 = vld [vmem:[%s3833_s19 + $0x68] sm:$0xff] }
0x12ac   : > { %v2113_v19 = vsel %vm812_vm1, %v3605_v18, 0.0  ;;  %2954 = vmatprep.subr.mxu1 %v3099_v2 }
0x12ad   : > { %2114 = vadd.xlane.f32.xlu0 %v2113_v19  ;;  %2955 = vmatpush3.msra.mxu1 %v2717_v26  ;;  %v2451_v26 = vld [vmem:[%s3833_s19 + $0x60] sm:$0xff] }
0x12ae   : > { %2956 = vmatprep.subr.mxu1 %v3099_v2 }
0x12af   : > { %2957 = vmatpush3.msra.mxu1 %v2716_v27  ;;  %v2450_v27 = vld [vmem:[%s3833_s19 + $0x58] sm:$0xff] }
0x12b0   : > { %2980 = vmatprep.subr.mxu1 %v3099_v2 }
0x1336   : > { %v2115_v20 = vpop.xlane.xlu0 %2114 }
0x1337   : > { %v2116_v21 = vmul.f32 0.03125, %v2115_v20 }
0x1339   : > { %v2117_v22 = vsub.f32 %v3605_v18, %v2116_v21 }
0x133b   : > { %v2118_v23 = vmul.f32 %v2117_v22, %v2117_v22 }
0x133d   : > { %v2119_v24 = vsel %vm812_vm1, %v2118_v23, 0.0 }
0x133e   : > { %2120 = vadd.xlane.f32.xlu1 %v2119_v24  ;;  %v2454_v24 = vld [vmem:[%s3833_s19 + $0x78] sm:$0xff] }
0x13c7   : > { %v2121_v28 = vpop.xlane.xlu1 %2120 }
0x13c8   : > { %v2122_v29 = vmul.f32 0.03125, %v2121_v28  ;;  %v2449_v28 = vld [vmem:[%s3833_s19 + $0x50] sm:$0xff] }
0x13ca   : > { %v2123_v31 = vadd.f32 1e-12, %v2122_v29  ;;  %v2448_v29 = vld [vmem:[%s3833_s19 + $0x48] sm:$0xff] }
0x13cc   : > { %3085 = vrsqrt.f32 %v2123_v31  ;;  %v2447_v31 = vld [vmem:[%s3833_s19 + $0x40] sm:$0xff] }
0x13d9   : > { %v3086_v32 = vpop.eup %3085 }
0x13da   : > { %v2125_v34 = vmul.f32 %v3086_v32, %v2117_v22  ;;  %v2446_v32 = vld [vmem:[%s3833_s19 + $0x38] sm:$0xff] }
0x13dc   : > { %v2132_v36 = vmul.f32 %v2714_v33, %v2125_v34  ;;  %v2445_v33 = vld [vmem:[%s3833_s19 + $0x30] sm:$0xff]  ;;  %v2444_v34 = vld [vmem:[%s3833_s19 + $0x28] sm:$0xff] }
0x13de   : > { %v2139_v37 = vadd.f32 %v2715_v35, %v2132_v36  ;;  %v2443_v35 = vld [vmem:[%s3833_s19 + $0x20] sm:$0xff]  ;;  %v2442_v36 = vld [vmem:[%s3833_s19 + $0x18] sm:$0xff] }
0x13e0   : > { %2959 = vmatmul.mubr.msk.f32.vlgmr.msra.gmra.mxu1 %vm852_vm3, %v2139_v37  ;;  %v2441_v37 = vld [vmem:[%s3833_s19 + $0x10] sm:$0xff] }
0x13e1   : > { %2988 = vmatprep.mubr.msk.f32.mxu1 %vm3100_vm2, %v3099_v2  ;;  %2981 = vmatpush3.msra.mxu1 %v2363_v1 }
0x13e2   : > { %2982 = vmatprep.subr.mxu1 %v3099_v2 }
0x13e3   : > { %2983 = vmatpush3.msra.mxu1 %v2362_v3 }
0x13e4   : > { %2984 = vmatprep.subr.mxu1 %v3099_v2 }
0x13e5   : > { %2985 = vmatpush3.msra.mxu1 %v2361_v4 }
0x13e6   : > { %2986 = vmatprep.subr.mxu1 %v3099_v2 }
0x13e7   : > { %2987 = vmatpush3.msra.mxu1 %v2360_v5 }
0x13e8   : > { %2991 = vmatprep.subr.mxu1 %v3099_v2 }
0x14a0   : > { %v2222_v46 = vpop.f32.mrf.mxu1 }
0x14a1   : > { %v2223_v47 = vadd.f32 %v2721_v45, %v2222_v46 }
0x14a2   : > { %v2960_v48 = vpop.f32.mrf.mxu1 }
0x14a3   : > { %v2227_v49 = vmul.f32 0.70710677, %v2223_v47  ;;  %v2226_v51 = vmul.f32 0.5, %v2223_v47 }
0x14a5   : > { %3087 = verf.f32 %v2227_v49  ;;  %v2529_v49 = vld [vmem:[%s3835_s21 + $0x10] sm:$0xff] }
0x14b2   : > { %v3088_v50 = vpop.eup %3087 }
0x14b3   : > { %v2229_v52 = vadd.f32 1.0, %v3088_v50  ;;  %v2528_v50 = vld [vmem:[%s3835_s21 + $0x8] sm:$0xff] }
0x14b5   : > { %v2230_v53 = vmul.f32 %v2229_v52, %v2226_v51  ;;  %v2527_v51 = vld [vmem:[%s3835_s21] sm:$0xff] }
0x14b6   : > { %v2455_v52 = vld [vmem:[%s3834_s20] sm:$0x1] }
0x14b7   : > { %2978 = vmatmul.mubr.msk.f32.vlgmr.msra.gmra.mxu0 %vm736_vm0, %v2230_v53 }
0x14b8   : > { %3042 = vmatprep.mubr.msk.f32.mxu0 %vm3100_vm2, %v3099_v2  ;;  %3027 = vmatpush3.msra.mxu0 %v2534_v40 }
0x14b9   : > { %3028 = vmatprep.subr.mxu0 %v3099_v2 }
0x14ba   : > { %3029 = vmatpush3.msra.mxu0 %v2533_v41 }
0x14bb   : > { %3030 = vmatprep.subr.mxu0 %v3099_v2 }
0x14bc   : > { %3031 = vmatpush3.msra.mxu0 %v2532_v42 }
0x14bd   : > { %3032 = vmatprep.subr.mxu0 %v3099_v2 }
0x14be   : > { %3033 = vmatpush3.msra.mxu0 %v2531_v43 }
0x14bf   : > { %3034 = vmatprep.subr.mxu0 %v3099_v2 }
0x14c0   : > { %3035 = vmatpush3.msra.mxu0 %v2530_v30 }
0x14c1   : > { %3036 = vmatprep.subr.mxu0 %v3099_v2 }
0x14c2   : > { %3037 = vmatpush3.msra.mxu0 %v2529_v49 }
0x14c3   : > { %3038 = vmatprep.subr.mxu0 %v3099_v2 }
0x14c4   : > { %3039 = vmatpush3.msra.mxu0 %v2528_v50 }
0x14c5   : > { %3040 = vmatprep.subr.mxu0 %v3099_v2 }
0x14c6   : > { %3041 = vmatpush3.msra.mxu0 %v2527_v51 }
0x1577   : > { %v2309_v54 = vpop.f32.mrf.mxu0 }
0x1578   : > { %v2313_v56 = vadd.f32 %v2309_v54, %v3605_v18 }
0x1579   : > { %v2979_v57 = vpop.f32.mrf.mxu0 }
0x157a   : > { %v2322_v58 = vadd.f32 %v2733_v55, %v2313_v56  ;;  %v2535_v57 = vld [vmem:[#allocation3] sm:$0x1] }
0x157c   : > { %v2325_v59 = vsel %vm812_vm1, %v2322_v58, 0.0 }
0x157d   : > { %2326 = vadd.xlane.f32.xlu0 %v2325_v59 }
0x1606   : > { %v2327_v60 = vpop.xlane.xlu0 %2326 }
0x1607   : > { %v2328_v61 = vmul.f32 0.03125, %v2327_v60 }
0x1609   : > { %v2329_v62 = vsub.f32 %v2322_v58, %v2328_v61 }
0x160b   : > { %v2330_v63 = vmul.f32 %v2329_v62, %v2329_v62 }
0x160d   : > { %v2331_v0 = vsel %vm812_vm1, %v2330_v63, 0.0 }
0x160e   : > { %2332 = vadd.xlane.f32.xlu0 %v2331_v0 }
0x1697   : > { %v2333_v6 = vpop.xlane.xlu0 %2332 }
0x1698   : > { %v2334_v7 = vmul.f32 0.03125, %v2333_v6 }
0x169a   : > { %v2335_v8 = vadd.f32 1e-12, %v2334_v7 }
0x169c   : > { %3089 = vrsqrt.f32 %v2335_v8 }
0x16a9   : > { %v3090_v9 = vpop.eup %3089 }
0x16aa   : > { %v2337_v11 = vmul.f32 %v3090_v9, %v2329_v62 }
0x16ac   : > { %v2344_v14 = vmul.f32 %v2734_v10, %v2337_v11 }
0x16ae   : > { %v2351_v15 = vadd.f32 %v2735_v12, %v2344_v14 }
0x16b0   : > { %v2352_v16 = vsel %vm812_vm1, %v2351_v15, 0.0 }
0x16b1   : > { %v2353_v17 = vrot.slane %v2352_v16, 4 }
0x16b3   : > { %v2354_v18 = vadd.f32 %v2353_v17, %v2352_v16 }
0x16b5   : > { %v2355_v19 = vrot.slane %v2354_v18, 2 }
0x16b7   : > { %v2356_v20 = vadd.f32 %v2355_v19, %v2354_v18 }
0x16b9   : > { %v2357_v21 = vrot.slane %v2356_v20, 1 }
0x16bb   : > { %v2358_v22 = vadd.f32 %v2357_v21, %v2356_v20 }
0x16bd   : > { %v2359_v23 = vmul.f32 0.2, %v2358_v22 }
0x16bf   : > { %2989 = vmatmul.mubr.msk.f32.vlgmr.msra.gmra.mxu1 %vm852_vm3, %v2359_v23 }
0x16c0   : > { %2992 = vmatpush3.msra.mxu1 %v2454_v24  ;;  %3023 = vmatprep.mubr.msk.f32.mxu1 %vm3100_vm2, %v3099_v2 }
0x16c1   : > { %2993 = vmatprep.subr.mxu1 %v3099_v2 }
0x16c2   : > { %2994 = vmatpush3.msra.mxu1 %v2453_v25 }
0x16c3   : > { %2995 = vmatprep.subr.mxu1 %v3099_v2 }
0x16c4   : > { %2996 = vmatpush3.msra.mxu1 %v2452_v13 }
0x16c5   : > { %2997 = vmatprep.subr.mxu1 %v3099_v2 }
0x16c6   : > { %2998 = vmatpush3.msra.mxu1 %v2451_v26 }
0x16c7   : > { %2999 = vmatprep.subr.mxu1 %v3099_v2 }
0x16c8   : > { %3000 = vmatpush3.msra.mxu1 %v2450_v27 }
0x16c9   : > { %3001 = vmatprep.subr.mxu1 %v3099_v2 }
0x16ca   : > { %3002 = vmatpush3.msra.mxu1 %v2449_v28 }
0x16cb   : > { %3003 = vmatprep.subr.mxu1 %v3099_v2 }
0x16cc   : > { %3004 = vmatpush3.msra.mxu1 %v2448_v29 }
0x16cd   : > { %3005 = vmatprep.subr.mxu1 %v3099_v2 }
0x16ce   : > { %3006 = vmatpush3.msra.mxu1 %v2447_v31 }
0x16cf   : > { %3007 = vmatprep.subr.mxu1 %v3099_v2 }
0x16d0   : > { %3008 = vmatpush3.msra.mxu1 %v2446_v32 }
0x16d1   : > { %3009 = vmatprep.subr.mxu1 %v3099_v2 }
0x16d2   : > { %3010 = vmatpush3.msra.mxu1 %v2445_v33 }
0x16d3   : > { %3011 = vmatprep.subr.mxu1 %v3099_v2 }
0x16d4   : > { %3012 = vmatpush3.msra.mxu1 %v2444_v34 }
0x16d5   : > { %3013 = vmatprep.subr.mxu1 %v3099_v2 }
0x16d6   : > { %3014 = vmatpush3.msra.mxu1 %v2443_v35 }
0x16d7   : > { %3015 = vmatprep.subr.mxu1 %v3099_v2 }
0x16d8   : > { %3016 = vmatpush3.msra.mxu1 %v2442_v36 }
0x16d9   : > { %3017 = vmatprep.subr.mxu1 %v3099_v2 }
0x16da   : > { %3018 = vmatpush3.msra.mxu1 %v2441_v37 }
0x16db   : > { %3019 = vmatprep.subr.mxu1 %v3099_v2 }
0x16dc   : > { %3020 = vmatpush3.msra.mxu1 %v2440_v38 }
0x16dd   : > { %3021 = vmatprep.subr.mxu1 %v3099_v2 }
0x16de   : > { %3022 = vmatpush3.msra.mxu1 %v2439_v39 }
0x177f   : > { %v2434_v45 = vpop.f32.mrf.mxu1 }
0x1780   : > { %v2435_v46 = vadd.f32 %v2434_v45, %v2364_v44 }
0x1781   : > { %v2990_v47 = vpop.f32.mrf.mxu1 }
0x1782   : > { %v2438_v48 = vmax.f32 %v2435_v46, 0.0 }
0x1784   : > { %3024 = vmatmul.mubr.f32.vlgmr.msra.gmra.mxu1 %v2438_v48 }
0x1844   : > { %v2522_v53 = vpop.f32.mrf.mxu1 }
0x1845   : > { %v2523_v54 = vadd.f32 %v2522_v53, %v2455_v52 }
0x1846   : > { %v3025_v55 = vpop.f32.mrf.mxu1 }
0x1847   : > { %v2526_v56 = vmax.f32 %v2523_v54, 0.0 }
0x1849   : > { %3043 = vmatmul.mubr.msk.f32.vlgmr.msra.gmra.mxu0 %vm736_vm0, %v2526_v56 }
0x1909   : > { %v2605_v58 = vpop.f32.mrf.mxu0 }
0x190a   : > { %v2606_v59 = vadd.f32 %v2605_v58, %v2535_v57 }
0x190b   : > { %v3044_v2 = vpop.f32.mrf.mxu0 }
0x190c   : > { %2610 = vst.msk [vmem:[%s708_s2] sm:$0x1] %vm2609_vm10, %v2606_v59 }
0x190d PF: > { %s35_s24 = sadd.s32 1, %s3097_s24  }
0x190e   : > { %p32_p4 = scmp.ge.s32.totalorder %s35_s24, 4  }
0x1910   :  { %34 = sbr.rel (!%p32_p4) target bundleno = 9 (0x9), region = 154 }

</bundles_post_ra>
